<compile_context>
chip_gen: v7x
topology: tpu7x:2x2x1
jax: 0.10.0
libtpu: 0.0.40
codegen_flags: <defaults>
</compile_context>

<pallas_src>
import jax
import jax.numpy as jnp
from jax import lax
from jax.experimental import pallas as pl
from jax.experimental.pallas import tpu as pltpu

EPS = 1e-5


def _conv1x1_bn_kernel(x_ref, w_ref, g_ref, b_ref, o_ref):
    # x_ref: (Cin, M) f32   w_ref: (Cout, Cin) f32   g_ref/b_ref: (Cout, 1) f32
    # o_ref: (Cout, M) f32
    #
    # MXU matmul with bf16 operands / f32 accumulation (per perf review: native
    # MXU dtype on v5e/v6e/v7x; BN math stays f32).
    w_bf = w_ref[...].astype(jnp.bfloat16)
    x_bf = x_ref[...].astype(jnp.bfloat16)
    y = lax.dot_general(
        w_bf, x_bf, (((1,), (0,)), ((), ())),
        preferred_element_type=jnp.float32)                    # (Cout, M) f32

    # Train-mode BatchNorm2d: biased batch statistics over the N*H*W axis.
    # One pass (sum, sum-of-squares), affine folded into scale/shift so the
    # elementwise epilogue is a single fused multiply-add per element.
    m = y.shape[1]
    inv_m = jnp.float32(1.0 / m)
    s1 = jnp.sum(y, axis=1, keepdims=True)                     # (Cout, 1)
    s2 = jnp.sum(y * y, axis=1, keepdims=True)                 # (Cout, 1)
    mean = s1 * inv_m
    var = jnp.maximum(s2 * inv_m - mean * mean, 0.0)
    inv_std = lax.rsqrt(var + EPS)
    scale = g_ref[...] * inv_std                               # (Cout, 1)
    shift = b_ref[...] - mean * scale                          # (Cout, 1)
    o_ref[...] = y * scale + shift


def conv2d_1x1_batchnorm(x_nchw, weight, gamma, beta):
    """x_nchw: (N, Cin, H, W) f32; weight: (Cout, Cin, 1, 1); gamma/beta: (Cout,)."""
    N, Cin, H, W = x_nchw.shape
    Cout = weight.shape[0]
    M = N * H * W

    if N == 1:
        x2d = x_nchw.reshape(Cin, M)                  # free reshape, no transpose
    else:
        # General-batch fallback (not exercised here: the module uses N == 1).
        x2d = jnp.transpose(x_nchw, (1, 0, 2, 3)).reshape(Cin, M)
    w2d = weight.reshape(Cout, Cin)                   # free reshape, no transpose
    g2d = gamma.reshape(Cout, 1).astype(jnp.float32)
    b2d = beta.reshape(Cout, 1).astype(jnp.float32)

    vmem = pltpu.MemorySpace.VMEM
    bytes_accessed = 4 * (Cin * M + Cout * Cin + Cout * M + 2 * Cout)
    out2d = pl.pallas_call(
        _conv1x1_bn_kernel,
        out_shape=jax.ShapeDtypeStruct((Cout, M), jnp.float32),
        # Single full-array block, fully VMEM-resident: no grid / pipeline
        # machinery needed for a ~1.3 MiB problem.
        in_specs=[
            pl.BlockSpec(memory_space=vmem),
            pl.BlockSpec(memory_space=vmem),
            pl.BlockSpec(memory_space=vmem),
            pl.BlockSpec(memory_space=vmem),
        ],
        out_specs=pl.BlockSpec(memory_space=vmem),
        cost_estimate=pl.CostEstimate(
            flops=2 * M * Cin * Cout,
            transcendentals=Cout,
            bytes_accessed=bytes_accessed),
    )(x2d, w2d, g2d, b2d)

    if N == 1:
        return out2d.reshape(1, Cout, H, W)           # free reshape back to NCHW
    return jnp.transpose(out2d.reshape(Cout, N, H, W), (1, 0, 2, 3))


if __name__ == "__main__":
    # Shapes implied by the module: Conv2d(768 -> 176, 1x1), input (1, 768, 14, 14)
    N, Cin, Cout, H, W = 1, 768, 176, 14, 14

    key = jax.random.PRNGKey(0)
    kx, kw, kg, kb = jax.random.split(key, 4)
    x = jax.random.normal(kx, (N, Cin, H, W), dtype=jnp.float32)
    # Deterministic synthetic parameters (Conv2d has bias=False).
    weight = jax.random.normal(kw, (Cout, Cin, 1, 1), dtype=jnp.float32) * 0.02
    gamma = 1.0 + 0.1 * jax.random.normal(kg, (Cout,), dtype=jnp.float32)
    beta = 0.1 * jax.random.normal(kb, (Cout,), dtype=jnp.float32)

    # TODO(synk): BatchNorm2d running_mean/running_var momentum update (module
    # state) is not reproduced; only the forward output is computed.
    fwd = jax.jit(conv2d_1x1_batchnorm)
    out = fwd(x, weight, gamma, beta)
    out = jax.block_until_ready(out)

    # Pure-JAX f32 reference (conv1x1 + train-mode batchnorm).  The kernel uses
    # bf16 matmul operands with f32 accumulation, so allow a slightly looser
    # tolerance than the pure-f32 path (observed error is a few 1e-3).
    y_ref = jnp.einsum("nchw,oc->nohw", x, weight.reshape(Cout, Cin))
    mean = jnp.mean(y_ref, axis=(0, 2, 3), keepdims=True)
    var = jnp.mean((y_ref - mean) ** 2, axis=(0, 2, 3), keepdims=True)
    ref = (y_ref - mean) * lax.rsqrt(var + EPS)
    ref = ref * gamma.reshape(1, Cout, 1, 1) + beta.reshape(1, Cout, 1, 1)

    assert out.shape == (N, Cout, H, W)
    assert jnp.max(jnp.abs(out - ref)) < 2e-2, "mismatch vs reference"

    print("KERNEL_OK")
</pallas_src>

<mosaic_0001>
module attributes {stable_mosaic.version = 11 : i64} {
  func.func @_conv1x1_bn_kernel(%arg0: memref<768x196xf32, #tpu.memory_space<vmem>>, %arg1: memref<176x768xf32, #tpu.memory_space<vmem>>, %arg2: memref<176x1xf32, #tpu.memory_space<vmem>>, %arg3: memref<176x1xf32, #tpu.memory_space<vmem>>, %arg4: memref<176x196xf32, #tpu.memory_space<vmem>>) attributes {dimension_semantics = [], scalar_prefetch = 0 : i64, scratch_operands = 0 : i64, tpu.core_type = #tpu.core_type<tc>} {
    %c0 = arith.constant 0 : index
    %c0_0 = arith.constant 0 : index
    %0 = vector.load %arg1[%c0, %c0_0] : memref<176x768xf32, #tpu.memory_space<vmem>>, vector<176x768xf32>
    %1 = arith.truncf %0 : vector<176x768xf32> to vector<176x768xbf16>
    %c0_1 = arith.constant 0 : index
    %c0_2 = arith.constant 0 : index
    %2 = vector.load %arg0[%c0_1, %c0_2] : memref<768x196xf32, #tpu.memory_space<vmem>>, vector<768x196xf32>
    %3 = arith.truncf %2 : vector<768x196xf32> to vector<768x196xbf16>
    %cst = arith.constant dense<0.000000e+00> : vector<176x196xf32>
    %4 = tpu.matmul %1, %3, %cst {dimension_numbers = #tpu.dot_dimension_numbers<[1], [0], [0], [1], [0, 0, 1, 1], [], []>} : vector<176x768xbf16>, vector<768x196xbf16>, vector<176x196xf32> -> vector<176x196xf32>
    %cst_3 = arith.constant dense<0.000000e+00> : vector<176xf32>
    %5 = vector.multi_reduction <add>, %4, %cst_3 [1] : vector<176x196xf32> to vector<176xf32>
    %6 = vector.shape_cast %5 : vector<176xf32> to vector<176x1xf32>
    %7 = arith.mulf %4, %4 : vector<176x196xf32>
    %cst_4 = arith.constant dense<0.000000e+00> : vector<176xf32>
    %8 = vector.multi_reduction <add>, %7, %cst_4 [1] : vector<176x196xf32> to vector<176xf32>
    %9 = vector.shape_cast %8 : vector<176xf32> to vector<176x1xf32>
    %cst_5 = arith.constant 0.00510204071 : f32
    %10 = vector.broadcast %cst_5 : f32 to vector<176x1xf32>
    %11 = arith.mulf %6, %10 : vector<176x1xf32>
    %cst_6 = arith.constant 0.00510204071 : f32
    %12 = vector.broadcast %cst_6 : f32 to vector<176x1xf32>
    %13 = arith.mulf %9, %12 : vector<176x1xf32>
    %14 = arith.mulf %11, %11 : vector<176x1xf32>
    %15 = arith.subf %13, %14 : vector<176x1xf32>
    %cst_7 = arith.constant 0.000000e+00 : f32
    %16 = vector.broadcast %cst_7 : f32 to vector<176x1xf32>
    %17 = arith.maximumf %15, %16 : vector<176x1xf32>
    %cst_8 = arith.constant 9.99999974E-6 : f32
    %18 = vector.broadcast %cst_8 : f32 to vector<176x1xf32>
    %19 = arith.addf %17, %18 : vector<176x1xf32>
    %20 = math.rsqrt %19 : vector<176x1xf32>
    %c0_9 = arith.constant 0 : index
    %c0_10 = arith.constant 0 : index
    %21 = vector.load %arg2[%c0_9, %c0_10] : memref<176x1xf32, #tpu.memory_space<vmem>>, vector<176x1xf32>
    %22 = arith.mulf %21, %20 : vector<176x1xf32>
    %c0_11 = arith.constant 0 : index
    %c0_12 = arith.constant 0 : index
    %23 = vector.load %arg3[%c0_11, %c0_12] : memref<176x1xf32, #tpu.memory_space<vmem>>, vector<176x1xf32>
    %24 = arith.mulf %11, %22 : vector<176x1xf32>
    %25 = arith.subf %23, %24 : vector<176x1xf32>
    %26 = vector.broadcast %22 : vector<176x1xf32> to vector<176x196xf32>
    %27 = arith.mulf %4, %26 : vector<176x196xf32>
    %28 = vector.broadcast %25 : vector<176x1xf32> to vector<176x196xf32>
    %29 = arith.addf %27, %28 : vector<176x196xf32>
    %c0_13 = arith.constant 0 : index
    %c0_14 = arith.constant 0 : index
    %30 = vector.load %arg4[%c0_13, %c0_14] : memref<176x196xf32, #tpu.memory_space<vmem>>, vector<176x196xf32>
    tpu.vector_store %arg4[%c0_13, %c0_14], %29 {strides = array<i32>} : memref<176x196xf32, #tpu.memory_space<vmem>>, vector<176x196xf32>,
    return
  }
}

</mosaic_0001>

<bundles_post_ra>
// kernel: conv2d_1x1_batchnorm.1
= control target key start
LH: loop header
LB: loop body
LE: loop exit
PB: predicated region body
PF: predicated region fallthrough
CT: control target
= control target key end

     0   :  { %vm932_vm0 = vcmask 556032   ;;  %s3783_s0 = inlined_call_operand.vmem [shape: f32[768,196], index: 0, kind: input, shape index: {}]   ;;  %s3784_s1 = inlined_call_operand.vmem [shape: f32[176,768], index: 1, kind: input, shape index: {}]   ;;  %s3785_s2 = inlined_call_operand.vmem [shape: f32[176,1], index: 2, kind: input, shape index: {}]   ;;  %s3786_s3 = inlined_call_operand.vmem [shape: f32[176,1], index: 3, kind: input, shape index: {}]   ;;  %s3787_s4 = inlined_call_operand.vmem [shape: f32[176,196], index: 4, kind: output, shape index: {}]  }
   0x1   :  { %v216_v0 = vld [vmem:[%s3783_s0 + $0x8] sm:$0xff]  ;;  %v218_v1 = vld [vmem:[%s3783_s0 + $0x18] sm:$0xff]  ;;  %v215_v5 = vld [vmem:[%s3783_s0] sm:$0xff] }
   0x2   :  { %v280_v2 = vld [vmem:[%s3783_s0 + $0x208] sm:$0xff]  ;;  %v408_v3 = vpack.c.bf16 %v218_v1, %v216_v0  ;;  %v282_v4 = vld [vmem:[%s3783_s0 + $0x218] sm:$0xff]  ;;  %v217_v6 = vld [vmem:[%s3783_s0 + $0x10] sm:$0xff] }
   0x3   :  { %v440_v7 = vpack.c.bf16 %v282_v4, %v280_v2  ;;  %v407_v8 = vpack.c.bf16 %v217_v6, %v215_v5  ;;  %v279_v9 = vld [vmem:[%s3783_s0 + $0x200] sm:$0xff]  ;;  %v281_v10 = vld [vmem:[%s3783_s0 + $0x210] sm:$0xff]  ;;  %v220_v11 = vld [vmem:[%s3783_s0 + $0x28] sm:$0xff] }
   0x4   :  { %503 = vmatprep.subr.bf16.mxu1 %v408_v3  ;;  %v439_v12 = vpack.c.bf16 %v281_v10, %v279_v9  ;;  %v222_v13 = vld [vmem:[%s3783_s0 + $0x38] sm:$0xff]  ;;  %v284_v14 = vld [vmem:[%s3783_s0 + $0x228] sm:$0xff]  ;;  %v219_v18 = vld [vmem:[%s3783_s0 + $0x20] sm:$0xff] }
   0x5   :  { %v286_v15 = vld [vmem:[%s3783_s0 + $0x238] sm:$0xff]  ;;  %646 = vmatprep.subr.bf16.mxu0 %v440_v7  ;;  %504 = vmatpush1.bf16.msra.mxu1 %v407_v8  ;;  %v410_v16 = vpack.c.bf16 %v222_v13, %v220_v11  ;;  %v221_v19 = vld [vmem:[%s3783_s0 + $0x30] sm:$0xff]  ;;  %v283_v20 = vld [vmem:[%s3783_s0 + $0x220] sm:$0xff] }
   0x6   :  { %v442_v17 = vpack.c.bf16 %v286_v15, %v284_v14  ;;  %647 = vmatpush1.bf16.msra.mxu0 %v439_v12  ;;  %v409_v21 = vpack.c.bf16 %v221_v19, %v219_v18  ;;  %v285_v22 = vld [vmem:[%s3783_s0 + $0x230] sm:$0xff]  ;;  %v224_v23 = vld [vmem:[%s3783_s0 + $0x48] sm:$0xff]  ;;  %v226_v24 = vld [vmem:[%s3783_s0 + $0x58] sm:$0xff] }
   0x7   :  { %505 = vmatprep.subr.bf16.mxu1 %v410_v16  ;;  %v441_v25 = vpack.c.bf16 %v285_v22, %v283_v20  ;;  %v412_v26 = vpack.c.bf16 %v226_v24, %v224_v23  ;;  %v288_v27 = vld [vmem:[%s3783_s0 + $0x248] sm:$0xff]  ;;  %v290_v28 = vld [vmem:[%s3783_s0 + $0x258] sm:$0xff]  ;;  %v223_v29 = vld [vmem:[%s3783_s0 + $0x40] sm:$0xff] }
   0x8   :  { %648 = vmatprep.subr.bf16.mxu0 %v442_v17  ;;  %v444_v30 = vpack.c.bf16 %v290_v28, %v288_v27  ;;  %v225_v31 = vld [vmem:[%s3783_s0 + $0x50] sm:$0xff]  ;;  %v287_v32 = vld [vmem:[%s3783_s0 + $0x240] sm:$0xff]  ;;  %v228_v35 = vld [vmem:[%s3783_s0 + $0x68] sm:$0xff] }
   0x9   :  { %v289_v33 = vld [vmem:[%s3783_s0 + $0x250] sm:$0xff]  ;;  %506 = vmatpush1.bf16.msra.mxu1 %v409_v21  ;;  %v411_v34 = vpack.c.bf16 %v225_v31, %v223_v29  ;;  %v230_v36 = vld [vmem:[%s3783_s0 + $0x78] sm:$0xff]  ;;  %v292_v37 = vld [vmem:[%s3783_s0 + $0x268] sm:$0xff] }
   0xa   :  { %649 = vmatpush1.bf16.msra.mxu0 %v441_v25  ;;  %507 = vmatprep.subr.bf16.mxu1 %v412_v26  ;;  %v443_v38 = vpack.c.bf16 %v289_v33, %v287_v32  ;;  %v414_v39 = vpack.c.bf16 %v230_v36, %v228_v35  ;;  %v294_v40 = vld [vmem:[%s3783_s0 + $0x278] sm:$0xff]  ;;  %v227_v41 = vld [vmem:[%s3783_s0 + $0x60] sm:$0xff]  ;;  %v229_v42 = vld [vmem:[%s3783_s0 + $0x70] sm:$0xff] }
   0xb   :  { %650 = vmatprep.subr.bf16.mxu0 %v444_v30  ;;  %v446_v43 = vpack.c.bf16 %v294_v40, %v292_v37  ;;  %v291_v44 = vld [vmem:[%s3783_s0 + $0x260] sm:$0xff]  ;;  %v293_v45 = vld [vmem:[%s3783_s0 + $0x270] sm:$0xff]  ;;  %v232_v46 = vld [vmem:[%s3783_s0 + $0x88] sm:$0xff]  ;;  %v413_v50 = vpack.c.bf16 %v229_v42, %v227_v41 }
   0xc   :  { %v234_v47 = vld [vmem:[%s3783_s0 + $0x98] sm:$0xff]  ;;  %v296_v48 = vld [vmem:[%s3783_s0 + $0x288] sm:$0xff]  ;;  %v445_v51 = vpack.c.bf16 %v293_v45, %v291_v44  ;;  %v231_v53 = vld [vmem:[%s3783_s0 + $0x80] sm:$0xff] }
   0xd   :  { %v298_v49 = vld [vmem:[%s3783_s0 + $0x298] sm:$0xff]  ;;  %508 = vmatpush1.bf16.msra.mxu1 %v411_v34  ;;  %v416_v52 = vpack.c.bf16 %v234_v47, %v232_v46  ;;  %v233_v54 = vld [vmem:[%s3783_s0 + $0x90] sm:$0xff]  ;;  %v295_v55 = vld [vmem:[%s3783_s0 + $0x280] sm:$0xff] }
   0xe   :  { %651 = vmatpush1.bf16.msra.mxu0 %v443_v38  ;;  %509 = vmatprep.subr.bf16.mxu1 %v414_v39  ;;  %v448_v56 = vpack.c.bf16 %v298_v49, %v296_v48  ;;  %v297_v57 = vld [vmem:[%s3783_s0 + $0x290] sm:$0xff]  ;;  %v236_v58 = vld [vmem:[%s3783_s0 + $0xa8] sm:$0xff]  ;;  %v238_v59 = vld [vmem:[%s3783_s0 + $0xb8] sm:$0xff]  ;;  %v415_v62 = vpack.c.bf16 %v233_v54, %v231_v53 }
   0xf   :  { %652 = vmatprep.subr.bf16.mxu0 %v446_v43  ;;  %v300_v60 = vld [vmem:[%s3783_s0 + $0x2a8] sm:$0xff]  ;;  %v302_v61 = vld [vmem:[%s3783_s0 + $0x2b8] sm:$0xff]  ;;  %v447_v63 = vpack.c.bf16 %v297_v57, %v295_v55  ;;  %v418_v0 = vpack.c.bf16 %v238_v59, %v236_v58  ;;  %v235_v1 = vld [vmem:[%s3783_s0 + $0xa0] sm:$0xff] }
  0x10   :  { %v237_v2 = vld [vmem:[%s3783_s0 + $0xb0] sm:$0xff]  ;;  %v299_v3 = vld [vmem:[%s3783_s0 + $0x2a0] sm:$0xff]  ;;  %v450_v4 = vpack.c.bf16 %v302_v61, %v300_v60  ;;  %v240_v6 = vld [vmem:[%s3783_s0 + $0xc8] sm:$0xff] }
  0x11   :  { %510 = vmatpush1.bf16.msra.mxu1 %v413_v50  ;;  %v301_v5 = vld [vmem:[%s3783_s0 + $0x2b0] sm:$0xff]  ;;  %v242_v7 = vld [vmem:[%s3783_s0 + $0xd8] sm:$0xff]  ;;  %v304_v8 = vld [vmem:[%s3783_s0 + $0x2c8] sm:$0xff]  ;;  %v417_v10 = vpack.c.bf16 %v237_v2, %v235_v1 }
  0x12   :  { %653 = vmatpush1.bf16.msra.mxu0 %v445_v51  ;;  %511 = vmatprep.subr.bf16.mxu1 %v416_v52  ;;  %v306_v9 = vld [vmem:[%s3783_s0 + $0x2d8] sm:$0xff]  ;;  %v449_v11 = vpack.c.bf16 %v301_v5, %v299_v3  ;;  %v420_v12 = vpack.c.bf16 %v242_v7, %v240_v6  ;;  %v239_v13 = vld [vmem:[%s3783_s0 + $0xc0] sm:$0xff]  ;;  %v241_v14 = vld [vmem:[%s3783_s0 + $0xd0] sm:$0xff] }
  0x13   :  { %654 = vmatprep.subr.bf16.mxu0 %v448_v56  ;;  %v303_v15 = vld [vmem:[%s3783_s0 + $0x2c0] sm:$0xff]  ;;  %v452_v16 = vpack.c.bf16 %v306_v9, %v304_v8  ;;  %v305_v17 = vld [vmem:[%s3783_s0 + $0x2d0] sm:$0xff]  ;;  %v244_v18 = vld [vmem:[%s3783_s0 + $0xe8] sm:$0xff]  ;;  %v419_v22 = vpack.c.bf16 %v241_v14, %v239_v13 }
  0x14   :  { %v246_v19 = vld [vmem:[%s3783_s0 + $0xf8] sm:$0xff]  ;;  %v308_v20 = vld [vmem:[%s3783_s0 + $0x2e8] sm:$0xff]  ;;  %v451_v23 = vpack.c.bf16 %v305_v17, %v303_v15  ;;  %v243_v25 = vld [vmem:[%s3783_s0 + $0xe0] sm:$0xff] }
  0x15   :  { %512 = vmatpush1.bf16.msra.mxu1 %v415_v62  ;;  %v310_v21 = vld [vmem:[%s3783_s0 + $0x2f8] sm:$0xff]  ;;  %v422_v24 = vpack.c.bf16 %v246_v19, %v244_v18  ;;  %v245_v26 = vld [vmem:[%s3783_s0 + $0xf0] sm:$0xff]  ;;  %v307_v27 = vld [vmem:[%s3783_s0 + $0x2e0] sm:$0xff] }
  0x16   :  { %655 = vmatpush1.bf16.msra.mxu0 %v447_v63  ;;  %513 = vmatprep.subr.bf16.mxu1 %v418_v0  ;;  %v454_v28 = vpack.c.bf16 %v310_v21, %v308_v20  ;;  %v309_v29 = vld [vmem:[%s3783_s0 + $0x2f0] sm:$0xff]  ;;  %v248_v30 = vld [vmem:[%s3783_s0 + $0x108] sm:$0xff]  ;;  %v250_v31 = vld [vmem:[%s3783_s0 + $0x118] sm:$0xff]  ;;  %v421_v34 = vpack.c.bf16 %v245_v26, %v243_v25 }
  0x17   :  { %656 = vmatprep.subr.bf16.mxu0 %v450_v4  ;;  %v312_v32 = vld [vmem:[%s3783_s0 + $0x308] sm:$0xff]  ;;  %v314_v33 = vld [vmem:[%s3783_s0 + $0x318] sm:$0xff]  ;;  %v453_v35 = vpack.c.bf16 %v309_v29, %v307_v27  ;;  %v424_v36 = vpack.c.bf16 %v250_v31, %v248_v30  ;;  %v247_v37 = vld [vmem:[%s3783_s0 + $0x100] sm:$0xff] }
  0x18   :  { %v249_v38 = vld [vmem:[%s3783_s0 + $0x110] sm:$0xff]  ;;  %v311_v39 = vld [vmem:[%s3783_s0 + $0x300] sm:$0xff]  ;;  %v456_v40 = vpack.c.bf16 %v314_v33, %v312_v32  ;;  %v252_v42 = vld [vmem:[%s3783_s0 + $0x128] sm:$0xff] }
  0x19   :  { %514 = vmatpush1.bf16.msra.mxu1 %v417_v10  ;;  %v313_v41 = vld [vmem:[%s3783_s0 + $0x310] sm:$0xff]  ;;  %v254_v43 = vld [vmem:[%s3783_s0 + $0x138] sm:$0xff]  ;;  %v316_v44 = vld [vmem:[%s3783_s0 + $0x328] sm:$0xff]  ;;  %v423_v46 = vpack.c.bf16 %v249_v38, %v247_v37 }
  0x1a   :  { %657 = vmatpush1.bf16.msra.mxu0 %v449_v11  ;;  %515 = vmatprep.subr.bf16.mxu1 %v420_v12  ;;  %v318_v45 = vld [vmem:[%s3783_s0 + $0x338] sm:$0xff]  ;;  %v455_v47 = vpack.c.bf16 %v313_v41, %v311_v39  ;;  %v426_v48 = vpack.c.bf16 %v254_v43, %v252_v42  ;;  %v251_v49 = vld [vmem:[%s3783_s0 + $0x120] sm:$0xff]  ;;  %v253_v50 = vld [vmem:[%s3783_s0 + $0x130] sm:$0xff] }
  0x1b   :  { %658 = vmatprep.subr.bf16.mxu0 %v452_v16  ;;  %v315_v51 = vld [vmem:[%s3783_s0 + $0x320] sm:$0xff]  ;;  %v458_v52 = vpack.c.bf16 %v318_v45, %v316_v44  ;;  %v317_v53 = vld [vmem:[%s3783_s0 + $0x330] sm:$0xff]  ;;  %v256_v54 = vld [vmem:[%s3783_s0 + $0x148] sm:$0xff]  ;;  %v425_v58 = vpack.c.bf16 %v253_v50, %v251_v49 }
  0x1c   :  { %v258_v55 = vld [vmem:[%s3783_s0 + $0x158] sm:$0xff]  ;;  %v320_v56 = vld [vmem:[%s3783_s0 + $0x348] sm:$0xff]  ;;  %v457_v59 = vpack.c.bf16 %v317_v53, %v315_v51  ;;  %v255_v61 = vld [vmem:[%s3783_s0 + $0x140] sm:$0xff] }
  0x1d   :  { %516 = vmatpush1.bf16.msra.mxu1 %v419_v22  ;;  %v322_v57 = vld [vmem:[%s3783_s0 + $0x358] sm:$0xff]  ;;  %v428_v60 = vpack.c.bf16 %v258_v55, %v256_v54  ;;  %v257_v62 = vld [vmem:[%s3783_s0 + $0x150] sm:$0xff]  ;;  %v319_v63 = vld [vmem:[%s3783_s0 + $0x340] sm:$0xff] }
  0x1e   :  { %659 = vmatpush1.bf16.msra.mxu0 %v451_v23  ;;  %517 = vmatprep.subr.bf16.mxu1 %v422_v24  ;;  %v460_v0 = vpack.c.bf16 %v322_v57, %v320_v56  ;;  %v321_v1 = vld [vmem:[%s3783_s0 + $0x350] sm:$0xff]  ;;  %v260_v2 = vld [vmem:[%s3783_s0 + $0x168] sm:$0xff]  ;;  %v262_v3 = vld [vmem:[%s3783_s0 + $0x178] sm:$0xff]  ;;  %v427_v6 = vpack.c.bf16 %v257_v62, %v255_v61 }
  0x1f   :  { %660 = vmatprep.subr.bf16.mxu0 %v454_v28  ;;  %v324_v4 = vld [vmem:[%s3783_s0 + $0x368] sm:$0xff]  ;;  %v326_v5 = vld [vmem:[%s3783_s0 + $0x378] sm:$0xff]  ;;  %v259_v7 = vld [vmem:[%s3783_s0 + $0x160] sm:$0xff]  ;;  %v459_v10 = vpack.c.bf16 %v321_v1, %v319_v63  ;;  %v430_v11 = vpack.c.bf16 %v262_v3, %v260_v2 }
  0x20   :  { %v261_v8 = vld [vmem:[%s3783_s0 + $0x170] sm:$0xff]  ;;  %v323_v9 = vld [vmem:[%s3783_s0 + $0x360] sm:$0xff]  ;;  %v264_v13 = vld [vmem:[%s3783_s0 + $0x188] sm:$0xff]  ;;  %v462_v15 = vpack.c.bf16 %v326_v5, %v324_v4 }
  0x21   :  { %518 = vmatpush1.bf16.msra.mxu1 %v421_v34  ;;  %v325_v12 = vld [vmem:[%s3783_s0 + $0x370] sm:$0xff]  ;;  %v266_v14 = vld [vmem:[%s3783_s0 + $0x198] sm:$0xff]  ;;  %v328_v16 = vld [vmem:[%s3783_s0 + $0x388] sm:$0xff]  ;;  %v429_v22 = vpack.c.bf16 %v261_v8, %v259_v7 }
  0x22   :  { %661 = vmatpush1.bf16.msra.mxu0 %v453_v35  ;;  %519 = vmatprep.subr.bf16.mxu1 %v424_v36  ;;  %v330_v17 = vld [vmem:[%s3783_s0 + $0x398] sm:$0xff]  ;;  %v18_v18 = vld [vmem:[%s3784_s1 + $0x8] sm:$0xff]  ;;  %v461_v25 = vpack.c.bf16 %v325_v12, %v323_v9  ;;  %v432_v26 = vpack.c.bf16 %v266_v14, %v264_v13  ;;  %v263_v27 = vld [vmem:[%s3783_s0 + $0x180] sm:$0xff] }
  0x23   :  { %662 = vmatprep.subr.bf16.mxu0 %v456_v40  ;;  %v24_v19 = vld [vmem:[%s3784_s1 + $0x38] sm:$0xff]  ;;  %v26_v21 = vld [vmem:[%s3784_s1 + $0x48] sm:$0xff]  ;;  %v265_v28 = vld [vmem:[%s3783_s0 + $0x190] sm:$0xff]  ;;  %v464_v30 = vpack.c.bf16 %v330_v17, %v328_v16 }
  0x24   :  { %v20_v20 = vld [vmem:[%s3784_s1 + $0x18] sm:$0xff]  ;;  %v150_v23 = vpack.c.bf16 %v24_v19, %v18_v18  ;;  %v327_v29 = vld [vmem:[%s3783_s0 + $0x380] sm:$0xff]  ;;  %v329_v31 = vld [vmem:[%s3783_s0 + $0x390] sm:$0xff]  ;;  %v431_v36 = vpack.c.bf16 %v265_v28, %v263_v27 }
  0x25   :  { %520 = vmatpush1.bf16.msra.mxu1 %v423_v46  ;;  %v152_v24 = vpack.c.bf16 %v26_v21, %v20_v20  ;;  %v268_v32 = vld [vmem:[%s3783_s0 + $0x1a8] sm:$0xff]  ;;  %v270_v33 = vld [vmem:[%s3783_s0 + $0x1b8] sm:$0xff]  ;;  %v463_v37 = vpack.c.bf16 %v329_v31, %v327_v29  ;;  %v267_v39 = vld [vmem:[%s3783_s0 + $0x1a0] sm:$0xff] }
  0x26   :  { %663 = vmatpush1.bf16.msra.mxu0 %v455_v47  ;;  %521 = vmatprep.subr.bf16.mxu1 %v426_v48  ;;  %v332_v34 = vld [vmem:[%s3783_s0 + $0x3a8] sm:$0xff]  ;;  %v334_v35 = vld [vmem:[%s3783_s0 + $0x3b8] sm:$0xff]  ;;  %v434_v38 = vpack.c.bf16 %v270_v33, %v268_v32  ;;  %v269_v40 = vld [vmem:[%s3783_s0 + $0x1b0] sm:$0xff] }
  0x27   :  { %664 = vmatprep.subr.bf16.mxu0 %v458_v52  ;;  %535 = vmatprep.mubr.bf16.mxu1 %v150_v23  ;;  %v331_v41 = vld [vmem:[%s3783_s0 + $0x3a0] sm:$0xff]  ;;  %v466_v42 = vpack.c.bf16 %v334_v35, %v332_v34  ;;  %v333_v43 = vld [vmem:[%s3783_s0 + $0x3b0] sm:$0xff]  ;;  %v272_v44 = vld [vmem:[%s3783_s0 + $0x1c8] sm:$0xff]  ;;  %v433_v48 = vpack.c.bf16 %v269_v40, %v267_v39 }
  0x28   :  { %678 = vmatprep.mubr.bf16.mxu0 %v152_v24  ;;  %v274_v45 = vld [vmem:[%s3783_s0 + $0x1d8] sm:$0xff]  ;;  %v336_v46 = vld [vmem:[%s3783_s0 + $0x3c8] sm:$0xff]  ;;  %v465_v49 = vpack.c.bf16 %v333_v43, %v331_v41  ;;  %v271_v51 = vld [vmem:[%s3783_s0 + $0x1c0] sm:$0xff] }
  0x29   :  { %522 = vmatpush1.bf16.msra.mxu1 %v425_v58  ;;  %v338_v47 = vld [vmem:[%s3783_s0 + $0x3d8] sm:$0xff]  ;;  %v436_v50 = vpack.c.bf16 %v274_v45, %v272_v44  ;;  %v273_v52 = vld [vmem:[%s3783_s0 + $0x1d0] sm:$0xff]  ;;  %v335_v53 = vld [vmem:[%s3783_s0 + $0x3c0] sm:$0xff] }
  0x2a   :  { %665 = vmatpush1.bf16.msra.mxu0 %v457_v59  ;;  %523 = vmatprep.subr.bf16.mxu1 %v428_v60  ;;  %v468_v54 = vpack.c.bf16 %v338_v47, %v336_v46  ;;  %v337_v55 = vld [vmem:[%s3783_s0 + $0x3d0] sm:$0xff]  ;;  %v276_v56 = vld [vmem:[%s3783_s0 + $0x1e8] sm:$0xff]  ;;  %v278_v57 = vld [vmem:[%s3783_s0 + $0x1f8] sm:$0xff]  ;;  %v435_v60 = vpack.c.bf16 %v273_v52, %v271_v51 }
  0x2b   :  { %666 = vmatprep.subr.bf16.mxu0 %v460_v0  ;;  %v340_v58 = vld [vmem:[%s3783_s0 + $0x3e8] sm:$0xff]  ;;  %v342_v59 = vld [vmem:[%s3783_s0 + $0x3f8] sm:$0xff]  ;;  %v467_v61 = vpack.c.bf16 %v337_v55, %v335_v53  ;;  %v438_v62 = vpack.c.bf16 %v278_v57, %v276_v56  ;;  %v275_v63 = vld [vmem:[%s3783_s0 + $0x1e0] sm:$0xff] }
  0x2c   :  { %v277_v0 = vld [vmem:[%s3783_s0 + $0x1f0] sm:$0xff]  ;;  %v339_v1 = vld [vmem:[%s3783_s0 + $0x3e0] sm:$0xff]  ;;  %v470_v2 = vpack.c.bf16 %v342_v59, %v340_v58  ;;  %v344_v4 = vld [vmem:[%s3783_s0 + $0x408] sm:$0xff] }
  0x2d   :  { %524 = vmatpush1.bf16.msra.mxu1 %v427_v6  ;;  %v341_v3 = vld [vmem:[%s3783_s0 + $0x3f0] sm:$0xff]  ;;  %v346_v5 = vld [vmem:[%s3783_s0 + $0x418] sm:$0xff]  ;;  %v437_v6 = vpack.c.bf16 %v277_v0, %v275_v63  ;;  %v17_v7 = vld [vmem:[%s3784_s1] sm:$0xff] }
  0x2e   :  { %667 = vmatpush1.bf16.msra.mxu0 %v459_v10  ;;  %525 = vmatprep.subr.bf16.mxu1 %v430_v11  ;;  %v23_v8 = vld [vmem:[%s3784_s1 + $0x30] sm:$0xff]  ;;  %v469_v10 = vpack.c.bf16 %v341_v3, %v339_v1  ;;  %v25_v11 = vld [vmem:[%s3784_s1 + $0x40] sm:$0xff]  ;;  %v472_v12 = vpack.c.bf16 %v346_v5, %v344_v4  ;;  %v30_v16 = vld [vmem:[%s3784_s1 + $0x68] sm:$0xff] }
  0x2f   :  { %668 = vmatprep.subr.bf16.mxu0 %v462_v15  ;;  %v19_v9 = vld [vmem:[%s3784_s1 + $0x10] sm:$0xff]  ;;  %v343_v13 = vld [vmem:[%s3783_s0 + $0x400] sm:$0xff]  ;;  %v348_v15 = vld [vmem:[%s3783_s0 + $0x428] sm:$0xff]  ;;  %v149_v18 = vpack.c.bf16 %v23_v8, %v17_v7 }
  0x30   :  { %v345_v14 = vld [vmem:[%s3783_s0 + $0x410] sm:$0xff]  ;;  %v36_v17 = vld [vmem:[%s3784_s1 + $0x98] sm:$0xff]  ;;  %v38_v21 = vld [vmem:[%s3784_s1 + $0xa8] sm:$0xff] }
  0x31   :  { %526 = vmatpush1.bf16.msra.mxu1 %v429_v22  ;;  %v350_v19 = vld [vmem:[%s3783_s0 + $0x438] sm:$0xff]  ;;  %v151_v22 = vpack.c.bf16 %v25_v11, %v19_v9  ;;  %v471_v23 = vpack.c.bf16 %v345_v14, %v343_v13  ;;  %v156_v24 = vpack.c.bf16 %v36_v17, %v30_v16  ;;  %v352_v29 = vld [vmem:[%s3783_s0 + $0x448] sm:$0xff]  ;;  %v29_v31 = vld [vmem:[%s3784_s1 + $0x60] sm:$0xff] }
  0x32   :  { %669 = vmatpush1.bf16.msra.mxu0 %v461_v25  ;;  %527 = vmatprep.subr.bf16.mxu1 %v432_v26  ;;  %v32_v20 = vld [vmem:[%s3784_s1 + $0x78] sm:$0xff]  ;;  %v347_v25 = vld [vmem:[%s3783_s0 + $0x420] sm:$0xff]  ;;  %v349_v26 = vld [vmem:[%s3783_s0 + $0x430] sm:$0xff]  ;;  %v474_v27 = vpack.c.bf16 %v350_v19, %v348_v15 }
  0x33   :  { %670 = vmatprep.subr.bf16.mxu0 %v464_v30  ;;  %v158_v28 = vpack.c.bf16 %v38_v21, %v32_v20  ;;  %v354_v30 = vld [vmem:[%s3783_s0 + $0x458] sm:$0xff]  ;;  %v473_v32 = vpack.c.bf16 %v349_v26, %v347_v25  ;;  %v35_v33 = vld [vmem:[%s3784_s1 + $0x90] sm:$0xff]  ;;  %v37_v35 = vld [vmem:[%s3784_s1 + $0xa0] sm:$0xff] }
  0x34   :  { %v31_v34 = vld [vmem:[%s3784_s1 + $0x70] sm:$0xff]  ;;  %v48_v39 = vld [vmem:[%s3784_s1 + $0xf8] sm:$0xff]  ;;  %v155_v43 = vpack.c.bf16 %v35_v33, %v29_v31  ;;  %v356_v44 = vld [vmem:[%s3783_s0 + $0x468] sm:$0xff] }
  0x35   :  { %528 = vmatpush1.bf16.msra.mxu1 %v431_v36  ;;  %v476_v36 = vpack.c.bf16 %v354_v30, %v352_v29  ;;  %v353_v40 = vld [vmem:[%s3783_s0 + $0x450] sm:$0xff]  ;;  %v44_v41 = vld [vmem:[%s3784_s1 + $0xd8] sm:$0xff]  ;;  %v157_v46 = vpack.c.bf16 %v37_v35, %v31_v34  ;;  %v355_v51 = vld [vmem:[%s3783_s0 + $0x460] sm:$0xff] }
  0x36   :  { %671 = vmatpush1.bf16.msra.mxu0 %v463_v37  ;;  %529 = vmatprep.subr.bf16.mxu1 %v434_v38  ;;  %v351_v37 = vld [vmem:[%s3783_s0 + $0x440] sm:$0xff]  ;;  %v42_v38 = vld [vmem:[%s3784_s1 + $0xc8] sm:$0xff]  ;;  %v358_v45 = vld [vmem:[%s3783_s0 + $0x478] sm:$0xff] }
  0x37   :  { %672 = vmatprep.subr.bf16.mxu0 %v466_v42  ;;  %v50_v42 = vld [vmem:[%s3784_s1 + $0x108] sm:$0xff]  ;;  %v162_v47 = vpack.c.bf16 %v48_v39, %v42_v38  ;;  %v357_v52 = vld [vmem:[%s3783_s0 + $0x470] sm:$0xff]  ;;  %v41_v53 = vld [vmem:[%s3784_s1 + $0xc0] sm:$0xff] }
  0x38   :  { %v362_v55 = vld [vmem:[%s3783_s0 + $0x498] sm:$0xff]  ;;  %v47_v56 = vld [vmem:[%s3784_s1 + $0xf0] sm:$0xff]  ;;  %v49_v58 = vld [vmem:[%s3784_s1 + $0x100] sm:$0xff]  ;;  %v477_v59 = vpack.c.bf16 %v357_v52, %v355_v51 }
  0x39   :  { %530 = vmatpush1.bf16.msra.mxu1 %v433_v48  ;;  %v475_v48 = vpack.c.bf16 %v353_v40, %v351_v37  ;;  %v43_v57 = vld [vmem:[%s3784_s1 + $0xd0] sm:$0xff]  ;;  %v62_v0 = vld [vmem:[%s3784_s1 + $0x168] sm:$0xff]  ;;  %v359_v1 = vld [vmem:[%s3783_s0 + $0x480] sm:$0xff]  ;;  %v161_v3 = vpack.c.bf16 %v47_v56, %v41_v53 }
  0x3a   :  { %673 = vmatpush1.bf16.msra.mxu0 %v465_v49  ;;  %531 = vmatprep.subr.bf16.mxu1 %v436_v50  ;;  %v164_v49 = vpack.c.bf16 %v50_v42, %v44_v41  ;;  %v478_v50 = vpack.c.bf16 %v358_v45, %v356_v44  ;;  %v364_v4 = vld [vmem:[%s3783_s0 + $0x4a8] sm:$0xff]  ;;  %v366_v5 = vld [vmem:[%s3783_s0 + $0x4b8] sm:$0xff]  ;;  %v363_v11 = vld [vmem:[%s3783_s0 + $0x4a0] sm:$0xff] }
  0x3b   :  { %674 = vmatprep.subr.bf16.mxu0 %v468_v54  ;;  %v360_v54 = vld [vmem:[%s3783_s0 + $0x488] sm:$0xff]  ;;  %v53_v13 = vld [vmem:[%s3784_s1 + $0x120] sm:$0xff]  ;;  %v370_v15 = vld [vmem:[%s3783_s0 + $0x4d8] sm:$0xff] }
  0x3c   :  { %v480_v63 = vpack.c.bf16 %v362_v55, %v360_v54  ;;  %v368_v14 = vld [vmem:[%s3783_s0 + $0x4c8] sm:$0xff]  ;;  %v59_v16 = vld [vmem:[%s3784_s1 + $0x150] sm:$0xff]  ;;  %v72_v21 = vld [vmem:[%s3784_s1 + $0x1b8] sm:$0xff] }
  0x3d   :  { %532 = vmatpush1.bf16.msra.mxu1 %v435_v60  ;;  %v54_v60 = vld [vmem:[%s3784_s1 + $0x128] sm:$0xff]  ;;  %v55_v17 = vld [vmem:[%s3784_s1 + $0x130] sm:$0xff]  ;;  %v367_v25 = vld [vmem:[%s3783_s0 + $0x4c0] sm:$0xff] }
  0x3e   :  { %675 = vmatpush1.bf16.msra.mxu0 %v467_v61  ;;  %533 = vmatprep.subr.bf16.mxu1 %v438_v62  ;;  %v60_v61 = vld [vmem:[%s3784_s1 + $0x158] sm:$0xff]  ;;  %v66_v20 = vld [vmem:[%s3784_s1 + $0x188] sm:$0xff]  ;;  %v369_v26 = vld [vmem:[%s3783_s0 + $0x4d0] sm:$0xff] }
  0x3f   :  { %676 = vmatprep.subr.bf16.mxu0 %v470_v2  ;;  %v56_v62 = vld [vmem:[%s3784_s1 + $0x138] sm:$0xff]  ;;  %v361_v2 = vld [vmem:[%s3783_s0 + $0x490] sm:$0xff]  ;;  %v168_v7 = vpack.c.bf16 %v60_v61, %v54_v60  ;;  %v174_v31 = vpack.c.bf16 %v72_v21, %v66_v20  ;;  %v483_v33 = vpack.c.bf16 %v369_v26, %v367_v25  ;;  %v371_v35 = vld [vmem:[%s3783_s0 + $0x4e0] sm:$0xff] }
  0x40   :  { %v170_v8 = vpack.c.bf16 %v62_v0, %v56_v62  ;;  %v479_v9 = vpack.c.bf16 %v361_v2, %v359_v1  ;;  %v374_v29 = vld [vmem:[%s3783_s0 + $0x4f8] sm:$0xff]  ;;  %v65_v37 = vld [vmem:[%s3784_s1 + $0x180] sm:$0xff]  ;;  %v376_v38 = vld [vmem:[%s3783_s0 + $0x508] sm:$0xff] }
  0x41   :  { %534 = vmatpush1.bf16.msra.mxu1 %v437_v6  ;;  %v163_v6 = vpack.c.bf16 %v49_v58, %v43_v57  ;;  %v378_v39 = vld [vmem:[%s3783_s0 + $0x518] sm:$0xff]  ;;  %v71_v40 = vld [vmem:[%s3784_s1 + $0x1b0] sm:$0xff]  ;;  %v73_v42 = vld [vmem:[%s3784_s1 + $0x1c0] sm:$0xff] }
  0x42   :  { %677 = vmatpush1.bf16.msra.mxu0 %v469_v10  ;;  %1773 = vmatprep.subr.bf16.mxu1 %v472_v12  ;;  %v482_v10 = vpack.c.bf16 %v366_v5, %v364_v4  ;;  %v67_v41 = vld [vmem:[%s3784_s1 + $0x190] sm:$0xff]  ;;  %v84_v44 = vld [vmem:[%s3784_s1 + $0x218] sm:$0xff]  ;;  %v173_v51 = vpack.c.bf16 %v71_v40, %v65_v37  ;;  %v380_v52 = vld [vmem:[%s3783_s0 + $0x528] sm:$0xff] }
  0x43   :  { %789 = vmatprep.subr.bf16.mxu0 %v472_v12  ;;  %v365_v12 = vld [vmem:[%s3783_s0 + $0x4b0] sm:$0xff]  ;;  %v80_v45 = vld [vmem:[%s3784_s1 + $0x1f8] sm:$0xff]  ;;  %v175_v54 = vpack.c.bf16 %v73_v42, %v67_v41  ;;  %v77_v61 = vld [vmem:[%s3784_s1 + $0x1e0] sm:$0xff] }
  0x44   :  { %536 = vmatmul.mubr.bf16.vlgmr.msra.gmra.mrb[0].mxu1 %v149_v18  ;;  %v61_v18 = vld [vmem:[%s3784_s1 + $0x160] sm:$0xff]  ;;  %v481_v19 = vpack.c.bf16 %v365_v12, %v363_v11  ;;  %v382_v53 = vld [vmem:[%s3783_s0 + $0x538] sm:$0xff]  ;;  %v381_v60 = vld [vmem:[%s3783_s0 + $0x530] sm:$0xff] }
  0x45   :  { %679 = vmatmul.mubr.bf16.vlgmr.msra.gmra.mrb[0].mxu0 %v151_v22  ;;  %1789 = vmatpush1.bf16.msra.mxu1 %v471_v23  ;;  %v68_v22 = vld [vmem:[%s3784_s1 + $0x198] sm:$0xff]  ;;  %v169_v30 = vpack.c.bf16 %v61_v18, %v55_v17  ;;  %v490_v58 = vpack.c.bf16 %v382_v53, %v380_v52  ;;  %v384_v62 = vld [vmem:[%s3783_s0 + $0x548] sm:$0xff]  ;;  %v83_v0 = vld [vmem:[%s3784_s1 + $0x210] sm:$0xff] }
  0x46   :  { %790 = vmatpush1.bf16.msra.mxu0 %v471_v23  ;;  %545 = vmatprep.mubr.bf16.mxu1 %v156_v24  ;;  %v74_v23 = vld [vmem:[%s3784_s1 + $0x1c8] sm:$0xff]  ;;  %v484_v24 = vpack.c.bf16 %v370_v15, %v368_v14  ;;  %v79_v1 = vld [vmem:[%s3784_s1 + $0x1f0] sm:$0xff]  ;;  %v85_v2 = vld [vmem:[%s3784_s1 + $0x220] sm:$0xff]  ;;  %v179_v11 = vpack.c.bf16 %v83_v0, %v77_v61 }
  0x47   :  { %791 = vmatprep.subr.bf16.mxu0 %v474_v27  ;;  %688 = vmatprep.mubr.bf16.mxu0 %v158_v28  ;;  %v372_v28 = vld [vmem:[%s3783_s0 + $0x4e8] sm:$0xff]  ;;  %v96_v4 = vld [vmem:[%s3784_s1 + $0x278] sm:$0xff]  ;;  %v181_v14 = vpack.c.bf16 %v85_v2, %v79_v1  ;;  %v389_v20 = vld [vmem:[%s3783_s0 + $0x570] sm:$0xff] }
  0x48   :  { %1774 = vmatprep.subr.bf16.mxu1 %v474_v27  ;;  %v167_v27 = vpack.c.bf16 %v59_v16, %v53_v13  ;;  %v486_v34 = vpack.c.bf16 %v374_v29, %v372_v28  ;;  %v92_v5 = vld [vmem:[%s3784_s1 + $0x258] sm:$0xff]  ;;  %v388_v12 = vld [vmem:[%s3783_s0 + $0x568] sm:$0xff]  ;;  %v89_v21 = vld [vmem:[%s3784_s1 + $0x240] sm:$0xff] }
  0x49   :  { %1790 = vmatpush1.bf16.msra.mxu1 %v473_v32  ;;  %v390_v13 = vld [vmem:[%s3783_s0 + $0x578] sm:$0xff]  ;;  %v91_v25 = vld [vmem:[%s3784_s1 + $0x250] sm:$0xff]  ;;  %v97_v26 = vld [vmem:[%s3784_s1 + $0x280] sm:$0xff] }
  0x4a   :  { %792 = vmatpush1.bf16.msra.mxu0 %v473_v32  ;;  %1775 = vmatprep.subr.bf16.mxu1 %v476_v36  ;;  %v176_v32 = vpack.c.bf16 %v74_v23, %v68_v22  ;;  %v494_v18 = vpack.c.bf16 %v390_v13, %v388_v12  ;;  %v392_v22 = vld [vmem:[%s3783_s0 + $0x588] sm:$0xff]  ;;  %v394_v23 = vld [vmem:[%s3783_s0 + $0x598] sm:$0xff] }
  0x4b   :  { %793 = vmatprep.subr.bf16.mxu0 %v476_v36  ;;  %v373_v36 = vld [vmem:[%s3783_s0 + $0x4f0] sm:$0xff]  ;;  %v108_v28 = vld [vmem:[%s3784_s1 + $0x2d8] sm:$0xff]  ;;  %v134_v13 = vld [vmem:[%s3784_s1 + $0x3a8] sm:$0xff] }
  0x4c   :  { %546 = vmatmul.mubr.bf16.gmra.mrb[4].mxu1 %v155_v43  ;;  %v78_v43 = vld [vmem:[%s3784_s1 + $0x1e8] sm:$0xff]  ;;  %v104_v29 = vld [vmem:[%s3784_s1 + $0x2b8] sm:$0xff] }
  0x4d   :  { %689 = vmatmul.mubr.bf16.gmra.mrb[4].mxu0 %v157_v46  ;;  %555 = vmatprep.mubr.bf16.mxu1 %v162_v47  ;;  %v485_v46 = vpack.c.bf16 %v373_v36, %v371_v35  ;;  %v86_v47 = vld [vmem:[%s3784_s1 + $0x228] sm:$0xff]  ;;  %v180_v55 = vpack.c.bf16 %v84_v44, %v78_v43  ;;  %v398_v37 = vld [vmem:[%s3783_s0 + $0x5b8] sm:$0xff]  ;;  %v395_v43 = vld [vmem:[%s3783_s0 + $0x5a0] sm:$0xff] }
  0x4e   :  { %794 = vmatpush1.bf16.msra.mxu0 %v475_v48  ;;  %698 = vmatprep.mubr.bf16.mxu0 %v164_v49  ;;  %v375_v49 = vld [vmem:[%s3783_s0 + $0x500] sm:$0xff]  ;;  %v182_v56 = vpack.c.bf16 %v86_v47, %v80_v45  ;;  %v396_v36 = vld [vmem:[%s3783_s0 + $0x5a8] sm:$0xff]  ;;  %v397_v44 = vld [vmem:[%s3783_s0 + $0x5b0] sm:$0xff] }
  0x4f   :  { %1791 = vmatpush1.bf16.msra.mxu1 %v475_v48  ;;  %795 = vmatprep.subr.bf16.mxu0 %v478_v50  ;;  %v488_v48 = vpack.c.bf16 %v378_v39, %v376_v38  ;;  %v187_v38 = vpack.c.bf16 %v97_v26, %v91_v25  ;;  %v498_v42 = vpack.c.bf16 %v398_v37, %v396_v36  ;;  %v101_v45 = vld [vmem:[%s3784_s1 + $0x2a0] sm:$0xff]  ;;  %v402_v47 = vld [vmem:[%s3783_s0 + $0x5d8] sm:$0xff]  ;;  %v146_v25 = vld [vmem:[%s3784_s1 + $0x408] sm:$0xff] }
  0x50   :  { %1776 = vmatprep.subr.bf16.mxu1 %v478_v50  ;;  %v377_v50 = vld [vmem:[%s3783_s0 + $0x510] sm:$0xff]  ;;  %v120_v52 = vld [vmem:[%s3784_s1 + $0x338] sm:$0xff]  ;;  %v22_v36 = vld [vmem:[%s3784_s1 + $0x28] sm:$0xff] }
  0x51   :  { %v487_v57 = vpack.c.bf16 %v377_v50, %v375_v49  ;;  %v103_v49 = vld [vmem:[%s3784_s1 + $0x2b0] sm:$0xff]  ;;  %v109_v50 = vld [vmem:[%s3784_s1 + $0x2e0] sm:$0xff]  ;;  %v116_v53 = vld [vmem:[%s3784_s1 + $0x318] sm:$0xff] }
  0x52   :  { %796 = vmatpush1.bf16.msra.mxu0 %v477_v59  ;;  %v406_v61 = vld [vmem:[%s3783_s0 + $0x5f8] sm:$0xff] }
  0x53   :  { %1792 = vmatpush1.bf16.msra.mxu1 %v477_v59  ;;  %797 = vmatprep.subr.bf16.mxu0 %v480_v63  ;;  %v379_v59 = vld [vmem:[%s3783_s0 + $0x520] sm:$0xff]  ;;  %v128_v12 = vld [vmem:[%s3784_s1 + $0x378] sm:$0xff] }
  0x54   :  { %556 = vmatmul.mubr.bf16.gmra.mrb[8].mxu1 %v161_v3  ;;  %1777 = vmatprep.subr.bf16.mxu1 %v480_v63  ;;  %v386_v63 = vld [vmem:[%s3783_s0 + $0x558] sm:$0xff]  ;;  %v90_v3 = vld [vmem:[%s3784_s1 + $0x248] sm:$0xff] }
  0x55   :  { %699 = vmatmul.mubr.bf16.gmra.mrb[8].mxu0 %v163_v6  ;;  %565 = vmatprep.mubr.bf16.mxu1 %v168_v7  ;;  %v489_v6 = vpack.c.bf16 %v381_v60, %v379_v59  ;;  %v98_v7 = vld [vmem:[%s3784_s1 + $0x288] sm:$0xff]  ;;  %v186_v15 = vpack.c.bf16 %v96_v4, %v90_v3  ;;  %v403_v3 = vld [vmem:[%s3783_s0 + $0x5e0] sm:$0xff]  ;;  %v405_v4 = vld [vmem:[%s3783_s0 + $0x5f0] sm:$0xff] }
  0x56   :  { %708 = vmatprep.mubr.bf16.mxu0 %v170_v8  ;;  %798 = vmatpush1.bf16.msra.mxu0 %v479_v9  ;;  %v492_v8 = vpack.c.bf16 %v386_v63, %v384_v62  ;;  %v188_v16 = vpack.c.bf16 %v98_v7, %v92_v5  ;;  %v404_v60 = vld [vmem:[%s3783_s0 + $0x5e8] sm:$0xff]  ;;  %v193_v62 = vpack.c.bf16 %v109_v50, %v103_v49  ;;  %v113_v5 = vld [vmem:[%s3784_s1 + $0x300] sm:$0xff]  ;;  %v115_v7 = vld [vmem:[%s3784_s1 + $0x310] sm:$0xff] }
  0x57   :  { %1793 = vmatpush1.bf16.msra.mxu1 %v479_v9  ;;  %799 = vmatprep.subr.bf16.mxu0 %v482_v10  ;;  %v383_v9 = vld [vmem:[%s3783_s0 + $0x540] sm:$0xff]  ;;  %v502_v2 = vpack.c.bf16 %v406_v61, %v404_v60  ;;  %v28_v37 = vld [vmem:[%s3784_s1 + $0x58] sm:$0xff]  ;;  %v46_v60 = vld [vmem:[%s3784_s1 + $0xe8] sm:$0xff] }
  0x58   :  { %1778 = vmatprep.subr.bf16.mxu1 %v482_v10  ;;  %v385_v10 = vld [vmem:[%s3783_s0 + $0x550] sm:$0xff]  ;;  %v40_v49 = vld [vmem:[%s3784_s1 + $0xb8] sm:$0xff] }
  0x59   :  { %v491_v17 = vpack.c.bf16 %v385_v10, %v383_v9  ;;  %v126_v9 = vld [vmem:[%s3784_s1 + $0x368] sm:$0xff]  ;;  %v132_v10 = vld [vmem:[%s3784_s1 + $0x398] sm:$0xff] }
  0x5a   :  { %800 = vmatpush1.bf16.msra.mxu0 %v481_v19  ;;  %v52_v61 = vld [vmem:[%s3784_s1 + $0x118] sm:$0xff] }
  0x5b   :  { %1794 = vmatpush1.bf16.msra.mxu1 %v481_v19  ;;  %801 = vmatprep.subr.bf16.mxu0 %v484_v24  ;;  %v387_v19 = vld [vmem:[%s3783_s0 + $0x560] sm:$0xff] }
  0x5c   :  { %566 = vmatmul.mubr.bf16.gmra.mrb[12].mxu1 %v167_v27  ;;  %1779 = vmatprep.subr.bf16.mxu1 %v484_v24  ;;  %v95_v24 = vld [vmem:[%s3784_s1 + $0x270] sm:$0xff]  ;;  %v102_v27 = vld [vmem:[%s3784_s1 + $0x2a8] sm:$0xff] }
  0x5d   :  { %709 = vmatmul.mubr.bf16.gmra.mrb[12].mxu0 %v169_v30  ;;  %575 = vmatprep.mubr.bf16.mxu1 %v174_v31  ;;  %v493_v30 = vpack.c.bf16 %v389_v20, %v387_v19  ;;  %v110_v31 = vld [vmem:[%s3784_s1 + $0x2e8] sm:$0xff]  ;;  %v185_v35 = vpack.c.bf16 %v95_v24, %v89_v21  ;;  %v192_v39 = vpack.c.bf16 %v108_v28, %v102_v27  ;;  %v131_v19 = vld [vmem:[%s3784_s1 + $0x390] sm:$0xff]  ;;  %v133_v21 = vld [vmem:[%s3784_s1 + $0x3a0] sm:$0xff] }
  0x5e   :  { %718 = vmatprep.mubr.bf16.mxu0 %v176_v32  ;;  %802 = vmatpush1.bf16.msra.mxu0 %v483_v33  ;;  %v496_v32 = vpack.c.bf16 %v394_v23, %v392_v22  ;;  %v194_v40 = vpack.c.bf16 %v110_v31, %v104_v29  ;;  %v127_v20 = vld [vmem:[%s3784_s1 + $0x370] sm:$0xff]  ;;  %v138_v22 = vld [vmem:[%s3784_s1 + $0x3c8] sm:$0xff]  ;;  %v144_v23 = vld [vmem:[%s3784_s1 + $0x3f8] sm:$0xff] }
  0x5f   :  { %1795 = vmatpush1.bf16.msra.mxu1 %v483_v33  ;;  %803 = vmatprep.subr.bf16.mxu0 %v486_v34  ;;  %v391_v33 = vld [vmem:[%s3783_s0 + $0x580] sm:$0xff]  ;;  %v140_v24 = vld [vmem:[%s3784_s1 + $0x3d8] sm:$0xff]  ;;  %v205_v27 = vpack.c.bf16 %v133_v21, %v127_v20  ;;  %v210_v28 = vpack.c.bf16 %v144_v23, %v138_v22  ;;  %v143_v31 = vld [vmem:[%s3784_s1 + $0x3f0] sm:$0xff] }
  0x60   :  { %1780 = vmatprep.subr.bf16.mxu1 %v486_v34  ;;  %v393_v34 = vld [vmem:[%s3783_s0 + $0x590] sm:$0xff]  ;;  %v212_v29 = vpack.c.bf16 %v146_v25, %v140_v24  ;;  %v70_v20 = vld [vmem:[%s3784_s1 + $0x1a8] sm:$0xff]  ;;  %v76_v21 = vld [vmem:[%s3784_s1 + $0x1d8] sm:$0xff] }
  0x61   :  { %v495_v41 = vpack.c.bf16 %v393_v34, %v391_v33  ;;  %v145_v33 = vld [vmem:[%s3784_s1 + $0x400] sm:$0xff]  ;;  %v94_v34 = vld [vmem:[%s3784_s1 + $0x268] sm:$0xff]  ;;  %v178_v25 = vpack.c.bf16 %v76_v21, %v70_v20 }
  0x62   :  { %804 = vmatpush1.bf16.msra.mxu0 %v485_v46 }
  0x63   :  { %1796 = vmatpush1.bf16.msra.mxu1 %v485_v46  ;;  %805 = vmatprep.subr.bf16.mxu0 %v488_v48  ;;  %v400_v46 = vld [vmem:[%s3783_s0 + $0x5c8] sm:$0xff] }
  0x64   :  { %576 = vmatmul.mubr.bf16.gmra.mrb[16].mxu1 %v173_v51  ;;  %1781 = vmatprep.subr.bf16.mxu1 %v488_v48  ;;  %v107_v48 = vld [vmem:[%s3784_s1 + $0x2d0] sm:$0xff]  ;;  %v114_v51 = vld [vmem:[%s3784_s1 + $0x308] sm:$0xff] }
  0x65   :  { %719 = vmatmul.mubr.bf16.gmra.mrb[16].mxu0 %v175_v54  ;;  %585 = vmatprep.mubr.bf16.mxu1 %v180_v55  ;;  %v497_v54 = vpack.c.bf16 %v397_v44, %v395_v43  ;;  %v122_v55 = vld [vmem:[%s3784_s1 + $0x348] sm:$0xff]  ;;  %v191_v59 = vpack.c.bf16 %v107_v48, %v101_v45  ;;  %v198_v63 = vpack.c.bf16 %v120_v52, %v114_v51  ;;  %v93_v43 = vld [vmem:[%s3784_s1 + $0x260] sm:$0xff]  ;;  %v99_v44 = vld [vmem:[%s3784_s1 + $0x290] sm:$0xff] }
  0x66   :  { %728 = vmatprep.mubr.bf16.mxu0 %v182_v56  ;;  %806 = vmatpush1.bf16.msra.mxu0 %v487_v57  ;;  %v500_v56 = vpack.c.bf16 %v402_v47, %v400_v46  ;;  %v200_v0 = vpack.c.bf16 %v122_v55, %v116_v53  ;;  %v27_v45 = vld [vmem:[%s3784_s1 + $0x50] sm:$0xff]  ;;  %v106_v46 = vld [vmem:[%s3784_s1 + $0x2c8] sm:$0xff]  ;;  %v112_v47 = vld [vmem:[%s3784_s1 + $0x2f8] sm:$0xff]  ;;  %v189_v50 = vpack.c.bf16 %v99_v44, %v93_v43 }
  0x67   :  { %1797 = vmatpush1.bf16.msra.mxu1 %v487_v57  ;;  %807 = vmatprep.subr.bf16.mxu0 %v490_v58  ;;  %v399_v57 = vld [vmem:[%s3783_s0 + $0x5c0] sm:$0xff]  ;;  %v34_v48 = vld [vmem:[%s3784_s1 + $0x88] sm:$0xff]  ;;  %v196_v52 = vpack.c.bf16 %v112_v47, %v106_v46 }
  0x68   :  { %1782 = vmatprep.subr.bf16.mxu1 %v490_v58  ;;  %v401_v58 = vld [vmem:[%s3783_s0 + $0x5d0] sm:$0xff]  ;;  %v160_v53 = vpack.c.bf16 %v40_v49, %v34_v48  ;;  %v105_v55 = vld [vmem:[%s3784_s1 + $0x2c0] sm:$0xff] }
  0x69   :  { %v499_v1 = vpack.c.bf16 %v401_v58, %v399_v57  ;;  %v39_v57 = vld [vmem:[%s3784_s1 + $0xb0] sm:$0xff]  ;;  %v118_v58 = vld [vmem:[%s3784_s1 + $0x328] sm:$0xff] }
  0x6a   :  { %808 = vmatpush1.bf16.msra.mxu0 %v489_v6 }
  0x6b   :  { %1798 = vmatpush1.bf16.msra.mxu1 %v489_v6  ;;  %809 = vmatprep.subr.bf16.mxu0 %v492_v8  ;;  %v119_v6 = vld [vmem:[%s3784_s1 + $0x330] sm:$0xff] }
  0x6c   :  { %586 = vmatmul.mubr.bf16.gmra.mrb[20].mxu1 %v179_v11  ;;  %1783 = vmatprep.subr.bf16.mxu1 %v492_v8  ;;  %v121_v8 = vld [vmem:[%s3784_s1 + $0x340] sm:$0xff]  ;;  %v501_v11 = vpack.c.bf16 %v405_v4, %v403_v3  ;;  %v123_v4 = vld [vmem:[%s3784_s1 + $0x350] sm:$0xff] }
  0x6d   :  { %729 = vmatmul.mubr.bf16.gmra.mrb[20].mxu0 %v181_v14  ;;  %595 = vmatprep.mubr.bf16.mxu1 %v186_v15  ;;  %v197_v14 = vpack.c.bf16 %v119_v6, %v113_v5  ;;  %v199_v15 = vpack.c.bf16 %v121_v8, %v115_v7  ;;  %v117_v3 = vld [vmem:[%s3784_s1 + $0x320] sm:$0xff]  ;;  %v51_v5 = vld [vmem:[%s3784_s1 + $0x110] sm:$0xff]  ;;  %v130_v6 = vld [vmem:[%s3784_s1 + $0x388] sm:$0xff] }
  0x6e   :  { %738 = vmatprep.mubr.bf16.mxu0 %v188_v16  ;;  %810 = vmatpush1.bf16.msra.mxu0 %v491_v17  ;;  %v204_v16 = vpack.c.bf16 %v132_v10, %v126_v9  ;;  %v136_v7 = vld [vmem:[%s3784_s1 + $0x3b8] sm:$0xff]  ;;  %v58_v8 = vld [vmem:[%s3784_s1 + $0x148] sm:$0xff]  ;;  %v201_v10 = vpack.c.bf16 %v123_v4, %v117_v3 }
  0x6f   :  { %1799 = vmatpush1.bf16.msra.mxu1 %v491_v17  ;;  %811 = vmatprep.subr.bf16.mxu0 %v494_v18  ;;  %v206_v17 = vpack.c.bf16 %v134_v13, %v128_v12  ;;  %v64_v9 = vld [vmem:[%s3784_s1 + $0x178] sm:$0xff]  ;;  %v208_v12 = vpack.c.bf16 %v136_v7, %v130_v6 }
  0x70   :  { %1784 = vmatprep.subr.bf16.mxu1 %v494_v18  ;;  %v125_v18 = vld [vmem:[%s3784_s1 + $0x360] sm:$0xff]  ;;  %v172_v13 = vpack.c.bf16 %v64_v9, %v58_v8 }
  0x71   :  { %v203_v26 = vpack.c.bf16 %v131_v19, %v125_v18  ;;  %v142_v18 = vld [vmem:[%s3784_s1 + $0x3e8] sm:$0xff]  ;;  %v148_v19 = vld [vmem:[%s3784_s1 + $0x418] sm:$0xff] }
  0x72   :  { %812 = vmatpush1.bf16.msra.mxu0 %v493_v30  ;;  %v214_v24 = vpack.c.bf16 %v148_v19, %v142_v18 }
  0x73   :  { %1800 = vmatpush1.bf16.msra.mxu1 %v493_v30  ;;  %813 = vmatprep.subr.bf16.mxu0 %v496_v32  ;;  %v137_v30 = vld [vmem:[%s3784_s1 + $0x3c0] sm:$0xff] }
  0x74   :  { %596 = vmatmul.mubr.bf16.gmra.mrb[24].mxu1 %v185_v35  ;;  %1785 = vmatprep.subr.bf16.mxu1 %v496_v32  ;;  %v139_v32 = vld [vmem:[%s3784_s1 + $0x3d0] sm:$0xff]  ;;  %v100_v35 = vld [vmem:[%s3784_s1 + $0x298] sm:$0xff] }
  0x75   :  { %739 = vmatmul.mubr.bf16.gmra.mrb[24].mxu0 %v187_v38  ;;  %605 = vmatprep.mubr.bf16.mxu1 %v192_v39  ;;  %v209_v38 = vpack.c.bf16 %v143_v31, %v137_v30  ;;  %v211_v39 = vpack.c.bf16 %v145_v33, %v139_v32  ;;  %v82_v30 = vld [vmem:[%s3784_s1 + $0x208] sm:$0xff]  ;;  %v88_v31 = vld [vmem:[%s3784_s1 + $0x238] sm:$0xff] }
  0x76   :  { %748 = vmatprep.mubr.bf16.mxu0 %v194_v40  ;;  %814 = vmatpush1.bf16.msra.mxu0 %v495_v41  ;;  %v190_v40 = vpack.c.bf16 %v100_v35, %v94_v34  ;;  %v184_v34 = vpack.c.bf16 %v88_v31, %v82_v30  ;;  %v81_v35 = vld [vmem:[%s3784_s1 + $0x200] sm:$0xff] }
  0x77   :  { %1801 = vmatpush1.bf16.msra.mxu1 %v495_v41  ;;  %815 = vmatprep.subr.bf16.mxu0 %v498_v42  ;;  %v154_v41 = vpack.c.bf16 %v28_v37, %v22_v36  ;;  %v87_v36 = vld [vmem:[%s3784_s1 + $0x230] sm:$0xff] }
  0x78   :  { %1786 = vmatprep.subr.bf16.mxu1 %v498_v42  ;;  %v21_v42 = vld [vmem:[%s3784_s1 + $0x20] sm:$0xff]  ;;  %v183_v37 = vpack.c.bf16 %v87_v36, %v81_v35 }
  0x79   :  { %v153_v51 = vpack.c.bf16 %v27_v45, %v21_v42 }
  0x7a   :  { %816 = vmatpush1.bf16.msra.mxu0 %v497_v54 }
  0x7b   :  { %1802 = vmatpush1.bf16.msra.mxu1 %v497_v54  ;;  %817 = vmatprep.subr.bf16.mxu0 %v500_v56  ;;  %v33_v54 = vld [vmem:[%s3784_s1 + $0x80] sm:$0xff] }
  0x7c   :  { %606 = vmatmul.mubr.bf16.gmra.mrb[28].mxu1 %v191_v59  ;;  %1787 = vmatprep.subr.bf16.mxu1 %v500_v56  ;;  %v111_v56 = vld [vmem:[%s3784_s1 + $0x2f0] sm:$0xff]  ;;  %v124_v59 = vld [vmem:[%s3784_s1 + $0x358] sm:$0xff] }
  0x7d   :  { %749 = vmatmul.mubr.bf16.gmra.mrb[28].mxu0 %v193_v62  ;;  %615 = vmatprep.mubr.bf16.mxu1 %v198_v63  ;;  %v195_v62 = vpack.c.bf16 %v111_v56, %v105_v55  ;;  %v159_v63 = vpack.c.bf16 %v39_v57, %v33_v54 }
  0x7e   :  { %758 = vmatprep.mubr.bf16.mxu0 %v200_v0  ;;  %818 = vmatpush1.bf16.msra.mxu0 %v499_v1  ;;  %v202_v0 = vpack.c.bf16 %v124_v59, %v118_v58 }
  0x7f   :  { %1803 = vmatpush1.bf16.msra.mxu1 %v499_v1  ;;  %819 = vmatprep.subr.bf16.mxu0 %v502_v2  ;;  %v166_v1 = vpack.c.bf16 %v52_v61, %v46_v60 }
  0x80   :  { %1788 = vmatprep.subr.bf16.mxu1 %v502_v2  ;;  %v45_v2 = vld [vmem:[%s3784_s1 + $0xe0] sm:$0xff] }
  0x82   :  { %820 = vmatpush1.bf16.msra.mxu0 %v501_v11 }
  0x83   :  { %1804 = vmatpush1.bf16.msra.mxu1 %v501_v11  ;;  %v165_v11 = vpack.c.bf16 %v51_v5, %v45_v2 }
  0x84   :  { %616 = vmatmul.mubr.bf16.gmra.mrb[32].mxu1 %v197_v14  ;;  %v57_v14 = vld [vmem:[%s3784_s1 + $0x140] sm:$0xff] }
  0x85   :  { %759 = vmatmul.mubr.bf16.gmra.mrb[32].mxu0 %v199_v15  ;;  %625 = vmatprep.mubr.bf16.mxu1 %v204_v16  ;;  %v129_v15 = vld [vmem:[%s3784_s1 + $0x380] sm:$0xff]  ;;  %v135_v16 = vld [vmem:[%s3784_s1 + $0x3b0] sm:$0xff] }
  0x86   :  { %768 = vmatprep.mubr.bf16.mxu0 %v206_v17  ;;  %v63_v17 = vld [vmem:[%s3784_s1 + $0x170] sm:$0xff]  ;;  %v207_v22 = vpack.c.bf16 %v135_v16, %v129_v15 }
  0x87   :  { %v171_v23 = vpack.c.bf16 %v63_v17, %v57_v14 }
  0x8c   :  { %626 = vmatmul.mubr.bf16.gmra.mrb[36].mxu1 %v203_v26  ;;  %v141_v26 = vld [vmem:[%s3784_s1 + $0x3e0] sm:$0xff] }
  0x8d   :  { %769 = vmatmul.mubr.bf16.gmra.mrb[36].mxu0 %v205_v27  ;;  %635 = vmatprep.mubr.bf16.mxu1 %v210_v28  ;;  %v147_v27 = vld [vmem:[%s3784_s1 + $0x410] sm:$0xff]  ;;  %v69_v28 = vld [vmem:[%s3784_s1 + $0x1a0] sm:$0xff] }
  0x8e   :  { %778 = vmatprep.mubr.bf16.mxu0 %v212_v29  ;;  %v75_v29 = vld [vmem:[%s3784_s1 + $0x1d0] sm:$0xff]  ;;  %v213_v32 = vpack.c.bf16 %v147_v27, %v141_v26 }
  0x8f   :  { %v177_v33 = vpack.c.bf16 %v75_v29, %v69_v28 }
  0x94   :  { %636 = vmatmul.mubr.bf16.gmra.mrb[40].mxu1 %v209_v38 }
  0x95   :  { %779 = vmatmul.mubr.bf16.gmra.mrb[40].mxu0 %v211_v39  ;;  %881 = vmatprep.mubr.bf16.mxu1 %v190_v40 }
  0x96   :  { %821 = vmatprep.mubr.bf16.mxu0 %v154_v41 }
  0x9c   :  { %882 = vmatmul.mubr.bf16.vlgmr.msra.gmra.mrb[44].mxu1 %v189_v50 }
  0x9d   :  { %822 = vmatmul.mubr.bf16.vlgmr.msra.gmra.mrb[0].mxu0 %v153_v51  ;;  %891 = vmatprep.mubr.bf16.mxu1 %v196_v52 }
  0x9e   :  { %831 = vmatprep.mubr.bf16.mxu0 %v160_v53 }
  0xa4   :  { %892 = vmatmul.mubr.bf16.gmra.mrb[48].mxu1 %v195_v62 }
  0xa5   :  { %832 = vmatmul.mubr.bf16.gmra.mrb[4].mxu0 %v159_v63  ;;  %901 = vmatprep.mubr.bf16.mxu1 %v202_v0 }
  0xa6   :  { %841 = vmatprep.mubr.bf16.mxu0 %v166_v1 }
  0xac   :  { %902 = vmatmul.mubr.bf16.gmra.mrb[52].mxu1 %v201_v10 }
  0xad   :  { %842 = vmatmul.mubr.bf16.gmra.mrb[8].mxu0 %v165_v11  ;;  %911 = vmatprep.mubr.bf16.mxu1 %v208_v12 }
  0xae   :  { %851 = vmatprep.mubr.bf16.mxu0 %v172_v13 }
  0xb4   :  { %912 = vmatmul.mubr.bf16.gmra.mrb[56].mxu1 %v207_v22 }
  0xb5   :  { %852 = vmatmul.mubr.bf16.gmra.mrb[12].mxu0 %v171_v23  ;;  %921 = vmatprep.mubr.bf16.mxu1 %v214_v24 }
  0xb6   :  { %861 = vmatprep.mubr.bf16.mxu0 %v178_v25 }
  0xbc   :  { %922 = vmatmul.mubr.bf16.gmra.mrb[60].mxu1 %v213_v32 }
  0xbd   :  { %862 = vmatmul.mubr.bf16.gmra.mrb[16].mxu0 %v177_v33 }
  0xbe   :  { %871 = vmatprep.mubr.bf16.mxu0 %v184_v34 }
  0xc5   :  { %872 = vmatmul.mubr.bf16.gmra.mrb[20].mxu0 %v183_v37 }
 0x117   :  { %v2938_v38 = vpop.f32.mrb[0].mxu1 }
 0x118   :  { %v2940_v39 = vpop.f32.mrb[1].mxu1 }
 0x119   :  { %v2942_v40 = vpop.f32.mrb[2].mxu1 }
 0x11a   :  { %v2944_v41 = vpop.f32.mrb[3].mxu1 }
 0x11f   :  { %v2946_v42 = vpop.f32.mrb[4].mxu1 }
 0x120   :  { %v2948_v43 = vpop.f32.mrb[5].mxu1 }
 0x121   :  { %v2950_v44 = vpop.f32.mrb[6].mxu1 }
 0x122   :  { %v2952_v45 = vpop.f32.mrb[7].mxu1 }
 0x127   :  { %v2954_v46 = vpop.f32.mrb[8].mxu1 }
 0x128   :  { %v2956_v47 = vpop.f32.mrb[9].mxu1 }
 0x129   :  { %v2958_v48 = vpop.f32.mrb[10].mxu1 }
 0x12a   :  { %v2960_v49 = vpop.f32.mrb[11].mxu1 }
 0x12f   :  { %v2962_v50 = vpop.f32.mrb[12].mxu1 }
 0x130   :  { %v2964_v51 = vpop.f32.mrb[13].mxu1 }
 0x131   :  { %v2966_v52 = vpop.f32.mrb[14].mxu1 }
 0x132   :  { %v2968_v53 = vpop.f32.mrb[15].mxu1 }
 0x137   :  { %v2970_v54 = vpop.f32.mrb[16].mxu1 }
 0x138   :  { %v2972_v55 = vpop.f32.mrb[17].mxu1 }
 0x139   :  { %v2974_v56 = vpop.f32.mrb[18].mxu1 }
 0x13a   :  { %v2976_v57 = vpop.f32.mrb[19].mxu1 }
 0x13f   :  { %v2978_v58 = vpop.f32.mrb[20].mxu1 }
 0x140   :  { %v2980_v59 = vpop.f32.mrb[21].mxu1 }
 0x141   :  { %v2982_v60 = vpop.f32.mrb[22].mxu1 }
 0x142   :  { %v2984_v61 = vpop.f32.mrb[23].mxu1 }
 0x147   :  { %v597_v62 = vpop.f32.mrb[24].mxu1 }
 0x148   :  { %v740_v63 = vpop.f32.mrb[24].mxu0  ;;  %v599_v0 = vpop.f32.mrb[25].mxu1 }
 0x149   :  { %v741_v1 = vadd.f32 %v740_v63, %v597_v62  ;;  %v742_v2 = vpop.f32.mrb[25].mxu0  ;;  %v601_v3 = vpop.f32.mrb[26].mxu1 }
 0x14a   :  { %v743_v4 = vadd.f32 %v742_v2, %v599_v0  ;;  %v744_v5 = vpop.f32.mrb[26].mxu0  ;;  %v603_v6 = vpop.f32.mrb[27].mxu1 }
 0x14b   :  { %v745_v7 = vadd.f32 %v744_v5, %v601_v3  ;;  %v746_v8 = vpop.f32.mrb[27].mxu0 }
 0x14c   :  { %v2986_v9 = vadd.f32 %v746_v8, %v603_v6 }
 0x14f   :  { %v607_v10 = vpop.f32.mrb[28].mxu1 }
 0x150   :  { %v750_v11 = vpop.f32.mrb[28].mxu0  ;;  %v609_v12 = vpop.f32.mrb[29].mxu1 }
 0x151   :  { %v2988_v13 = vadd.f32 %v750_v11, %v607_v10  ;;  %v752_v14 = vpop.f32.mrb[29].mxu0  ;;  %v611_v15 = vpop.f32.mrb[30].mxu1 }
 0x152   :  { %v2990_v16 = vadd.f32 %v752_v14, %v609_v12  ;;  %v754_v17 = vpop.f32.mrb[30].mxu0  ;;  %v613_v18 = vpop.f32.mrb[31].mxu1 }
 0x153   :  { %v2992_v19 = vadd.f32 %v754_v17, %v611_v15  ;;  %v756_v20 = vpop.f32.mrb[31].mxu0 }
 0x154   :  { %v2994_v21 = vadd.f32 %v756_v20, %v613_v18 }
 0x157   :  { %v617_v22 = vpop.f32.mrb[32].mxu1 }
 0x158   :  { %v760_v23 = vpop.f32.mrb[32].mxu0  ;;  %v619_v24 = vpop.f32.mrb[33].mxu1 }
 0x159   :  { %v2996_v25 = vadd.f32 %v760_v23, %v617_v22  ;;  %v762_v26 = vpop.f32.mrb[33].mxu0  ;;  %v621_v27 = vpop.f32.mrb[34].mxu1 }
 0x15a   :  { %v2998_v28 = vadd.f32 %v762_v26, %v619_v24  ;;  %v764_v29 = vpop.f32.mrb[34].mxu0  ;;  %v623_v30 = vpop.f32.mrb[35].mxu1 }
 0x15b   :  { %v3000_v31 = vadd.f32 %v764_v29, %v621_v27  ;;  %v766_v32 = vpop.f32.mrb[35].mxu0 }
 0x15c   :  { %v3002_v33 = vadd.f32 %v766_v32, %v623_v30 }
 0x15f   :  { %v627_v34 = vpop.f32.mrb[36].mxu1 }
 0x160   :  { %v770_v35 = vpop.f32.mrb[36].mxu0  ;;  %v629_v36 = vpop.f32.mrb[37].mxu1 }
 0x161   :  { %v3004_v37 = vadd.f32 %v770_v35, %v627_v34  ;;  %v772_v62 = vpop.f32.mrb[37].mxu0  ;;  %v631_v63 = vpop.f32.mrb[38].mxu1 }
 0x162   :  { %v3006_v0 = vadd.f32 %v772_v62, %v629_v36  ;;  %v774_v2 = vpop.f32.mrb[38].mxu0  ;;  %v633_v3 = vpop.f32.mrb[39].mxu1 }
 0x163   :  { %v3008_v5 = vadd.f32 %v774_v2, %v631_v63  ;;  %v776_v6 = vpop.f32.mrb[39].mxu0 }
 0x164   :  { %v3010_v8 = vadd.f32 %v776_v6, %v633_v3 }
 0x167   :  { %v637_v10 = vpop.f32.mrb[40].mxu1 }
 0x168   :  { %v780_v11 = vpop.f32.mrb[40].mxu0  ;;  %v639_v12 = vpop.f32.mrb[41].mxu1 }
 0x169   :  { %v3012_v14 = vadd.f32 %v780_v11, %v637_v10  ;;  %v782_v15 = vpop.f32.mrb[41].mxu0  ;;  %v641_v17 = vpop.f32.mrb[42].mxu1 }
 0x16a   :  { %v3014_v18 = vadd.f32 %v782_v15, %v639_v12  ;;  %v784_v20 = vpop.f32.mrb[42].mxu0  ;;  %v643_v22 = vpop.f32.mrb[43].mxu1 }
 0x16b   :  { %v3016_v23 = vadd.f32 %v784_v20, %v641_v17  ;;  %v786_v24 = vpop.f32.mrb[43].mxu0 }
 0x16c   :  { %v3018_v26 = vadd.f32 %v786_v24, %v643_v22 }
 0x16f   :  { %v883_v27 = vpop.f32.mrb[44].mxu1 }
 0x170   :  { %v823_v29 = vpop.f32.mrb[0].mxu0  ;;  %v3020_v30 = vadd.f32 %v883_v27, %v741_v1  ;;  %v885_v32 = vpop.f32.mrb[45].mxu1 }
 0x171   :  { %v3023_v34 = vadd.f32 %v823_v29, %v2938_v38  ;;  %v825_v35 = vpop.f32.mrb[1].mxu0  ;;  %v3025_v36 = vadd.f32 %v885_v32, %v743_v4  ;;  %v887_v62 = vpop.f32.mrb[46].mxu1 }
 0x172   :  { %v3028_v63 = vadd.f32 %v825_v35, %v2940_v39  ;;  %v827_v2 = vpop.f32.mrb[2].mxu0  ;;  %v3030_v3 = vadd.f32 %v887_v62, %v745_v7  ;;  %v889_v6 = vpop.f32.mrb[47].mxu1 }
 0x173   :  { %v3033_v10 = vadd.f32 %v827_v2, %v2942_v40  ;;  %v829_v1 = vpop.f32.mrb[3].mxu0  ;;  %v3036_v11 = vadd.f32 %v889_v6, %v2986_v9  ;;  %v981_v40 = vsel %vm932_vm0, %v3025_v36, 0.0 }
 0x174   :  { %v3039_v38 = vadd.f32 %v829_v1, %v2944_v41  ;;  %v933_v4 = vsel %vm932_vm0, %v3028_v63, 0.0  ;;  %v982_v2 = vadd.f32 %v981_v40, %v3020_v30 }
 0x175   :  { %v934_v39 = vadd.f32 %v3023_v34, %v933_v4  ;;  %v985_v7 = vsel %vm932_vm0, %v3036_v11, 0.0  ;;  %v1048_v41 = vmul.f32 %v3036_v11, %v3036_v11  ;;  %v1023_v24 = vmul.f32 %v3033_v10, %v3033_v10 }
 0x176   :  { %v986_v12 = vadd.f32 %v985_v7, %v3030_v3  ;;  %v1024_v9 = vmul.f32 %v3039_v38, %v3039_v38  ;;  %v1022_v7 = vmul.f32 %v3028_v63, %v3028_v63 }
 0x177   :  { %935 = vadd.xlane.f32.xlu0 %v934_v39  ;;  %v893_v15 = vpop.f32.mrb[48].mxu1 }
 0x178   :  { %v833_v17 = vpop.f32.mrb[4].mxu0  ;;  %v3054_v20 = vadd.f32 %v893_v15, %v2988_v13  ;;  %v895_v22 = vpop.f32.mrb[49].mxu1  ;;  %987 = vadd.xlane.f32.xlu1 %v986_v12  ;;  %v1069_v27 = vsel %vm932_vm0, %v1024_v9, 0.0  ;;  %v937_v13 = vsel %vm932_vm0, %v3039_v38, 0.0 }
 0x179   :  { %v3060_v29 = vadd.f32 %v833_v17, %v2946_v42  ;;  %v835_v32 = vpop.f32.mrb[5].mxu0  ;;  %v3063_v35 = vadd.f32 %v895_v22, %v2990_v16  ;;  %v897_v62 = vpop.f32.mrb[50].mxu1  ;;  %v1070_v42 = vadd.f32 %v1069_v27, %v1023_v24  ;;  %v938_v15 = vadd.f32 %v3033_v10, %v937_v13 }
 0x17a   :  { %v3069_v6 = vadd.f32 %v835_v32, %v2948_v43  ;;  %v837_v1 = vpop.f32.mrb[6].mxu0  ;;  %v3072_v4 = vadd.f32 %v897_v62, %v2992_v19  ;;  %v899_v39 = vpop.f32.mrb[51].mxu1  ;;  %v1117_v43 = vsel %vm932_vm0, %v1048_v41, 0.0  ;;  %v1047_v19 = vmul.f32 %v3030_v3, %v3030_v3 }
 0x17b   :  { %v3077_v16 = vadd.f32 %v837_v1, %v2950_v44  ;;  %v839_v12 = vpop.f32.mrb[7].mxu0  ;;  %v3080_v40 = vadd.f32 %v899_v39, %v2994_v21  ;;  %983 = vadd.xlane.f32.xlu0 %v982_v2  ;;  %v1065_v44 = vsel %vm932_vm0, %v1022_v7, 0.0  ;;  %v1046_v22 = vmul.f32 %v3025_v36, %v3025_v36 }
 0x17c   :  { %v3084_v9 = vadd.f32 %v839_v12, %v2952_v45  ;;  %1071 = vadd.xlane.f32.xlu1 %v1070_v42  ;;  %v1118_v17 = vadd.f32 %v1117_v43, %v1047_v19  ;;  %v1021_v41 = vmul.f32 %v3023_v34, %v3023_v34  ;;  %v941_v45 = vsel %vm932_vm0, %v3069_v6, 0.0 }
 0x17d   :  { %v942_v43 = vadd.f32 %v3060_v29, %v941_v45  ;;  %v1113_v19 = vsel %vm932_vm0, %v1046_v22, 0.0 }
 0x17e   :  { %v1066_v39 = vadd.f32 %v1065_v44, %v1021_v41  ;;  %v1028_v45 = vmul.f32 %v3084_v9, %v3084_v9 }
 0x17f   :  { %939 = vadd.xlane.f32.xlu0 %v938_v15  ;;  %v903_v21 = vpop.f32.mrb[52].mxu1 }
 0x180   :  { %v843_v24 = vpop.f32.mrb[8].mxu0  ;;  %v3097_v27 = vadd.f32 %v903_v21, %v2996_v25  ;;  %v905_v32 = vpop.f32.mrb[53].mxu1  ;;  %1119 = vadd.xlane.f32.xlu1 %v1118_v17  ;;  %v1026_v21 = vmul.f32 %v3069_v6, %v3069_v6 }
 0x181   :  { %v3100_v62 = vadd.f32 %v843_v24, %v2954_v46  ;;  %v845_v2 = vpop.f32.mrb[9].mxu0  ;;  %v3103_v13 = vadd.f32 %v905_v32, %v2998_v28  ;;  %v907_v1 = vpop.f32.mrb[54].mxu1 }
 0x182   :  { %v3106_v42 = vadd.f32 %v845_v2, %v2956_v47  ;;  %v847_v7 = vpop.f32.mrb[10].mxu0  ;;  %v3109_v12 = vadd.f32 %v907_v1, %v3000_v31  ;;  %v909_v25 = vpop.f32.mrb[55].mxu1  ;;  %v1045_v47 = vmul.f32 %v3020_v30, %v3020_v30  ;;  %v945_v31 = vsel %vm932_vm0, %v3084_v9, 0.0 }
 0x183   :  { %v3114_v46 = vadd.f32 %v847_v7, %v2958_v48  ;;  %v849_v15 = vpop.f32.mrb[11].mxu0  ;;  %v3117_v28 = vadd.f32 %v909_v25, %v3002_v33  ;;  %1067 = vadd.xlane.f32.xlu0 %v1066_v39  ;;  %v989_v48 = vsel %vm932_vm0, %v3063_v35, 0.0  ;;  %v946_v22 = vadd.f32 %v3077_v16, %v945_v31 }
 0x184   :  { %v3124_v17 = vadd.f32 %v849_v15, %v2960_v49  ;;  %943 = vadd.xlane.f32.xlu1 %v942_v43  ;;  %v1114_v44 = vadd.f32 %v1113_v19, %v1045_v47  ;;  %v993_v33 = vsel %vm932_vm0, %v3080_v40, 0.0  ;;  %v990_v2 = vadd.f32 %v989_v48, %v3054_v20 }
 0x185   :  { %v994_v43 = vadd.f32 %v993_v33, %v3072_v4  ;;  %v1025_v19 = vmul.f32 %v3060_v29, %v3060_v29 }
 0x187   :  { %1115 = vadd.xlane.f32.xlu0 %v1114_v44  ;;  %v913_v41 = vpop.f32.mrb[56].mxu1 }
 0x188   :  { %v853_v49 = vpop.f32.mrb[12].mxu0  ;;  %v3136_v24 = vadd.f32 %v913_v41, %v3004_v37  ;;  %v915_v32 = vpop.f32.mrb[57].mxu1  ;;  %947 = vadd.xlane.f32.xlu1 %v946_v22 }
 0x189   :  { %v3140_v1 = vadd.f32 %v853_v49, %v2962_v50  ;;  %v855_v39 = vpop.f32.mrb[13].mxu0  ;;  %v3143_v7 = vadd.f32 %v915_v32, %v3006_v0  ;;  %v917_v25 = vpop.f32.mrb[58].mxu1  ;;  %v1073_v50 = vsel %vm932_vm0, %v1026_v21, 0.0  ;;  %v1050_v0 = vmul.f32 %v3063_v35, %v3063_v35 }
 0x18a   :  { %3801 = vst [vmem:[#allocation2_spill] sm:$0xff] %v3136_v24  ;;  %v3149_v37 = vadd.f32 %v855_v39, %v2964_v51  ;;  %v857_v15 = vpop.f32.mrb[14].mxu0  ;;  %v3152_v47 = vadd.f32 %v917_v25, %v3008_v5  ;;  %v919_v31 = vpop.f32.mrb[59].mxu1  ;;  %v1077_v51 = vsel %vm932_vm0, %v1028_v45, 0.0  ;;  %v1052_v5 = vmul.f32 %v3080_v40, %v3080_v40 }
 0x18b   :  { %3802 = vst [vmem:[#allocation3_spill] sm:$0xff] %v3143_v7  ;;  %v3158_v44 = vadd.f32 %v857_v15, %v2966_v52  ;;  %v859_v48 = vpop.f32.mrb[15].mxu0  ;;  %v3161_v22 = vadd.f32 %v919_v31, %v3010_v8  ;;  %991 = vadd.xlane.f32.xlu0 %v990_v2  ;;  %v1027_v21 = vmul.f32 %v3077_v16, %v3077_v16  ;;  %v1121_v49 = vsel %vm932_vm0, %v1050_v0, 0.0 }
 0x18c   :  { %3803 = vst [vmem:[#allocation4_spill] sm:$0xff] %v3149_v37  ;;  %v3167_v33 = vadd.f32 %v859_v48, %v2968_v53  ;;  %995 = vadd.xlane.f32.xlu1 %v994_v43  ;;  %v1074_v41 = vadd.f32 %v1073_v50, %v1025_v19  ;;  %v1049_v32 = vmul.f32 %v3054_v20, %v3054_v20  ;;  %v1125_v45 = vsel %vm932_vm0, %v1052_v5, 0.0 }
 0x18d   :  { %v1078_v52 = vadd.f32 %v1077_v51, %v1027_v21  ;;  %v1051_v25 = vmul.f32 %v3072_v4, %v3072_v4  ;;  %v949_v21 = vsel %vm932_vm0, %v3106_v42, 0.0 }
 0x18e   :  { %v1122_v50 = vadd.f32 %v1121_v49, %v1049_v32  ;;  %v1032_v32 = vmul.f32 %v3124_v17, %v3124_v17 }
 0x18f   :  { %1075 = vadd.xlane.f32.xlu0 %v1074_v41  ;;  %v923_v8 = vpop.f32.mrb[60].mxu1  ;;  %v1126_v5 = vadd.f32 %v1125_v45, %v1051_v25 }
 0x190   :  { %v863_v2 = vpop.f32.mrb[16].mxu0  ;;  %v3176_v39 = vadd.f32 %v923_v8, %v3012_v14  ;;  %v925_v53 = vpop.f32.mrb[61].mxu1  ;;  %1079 = vadd.xlane.f32.xlu1 %v1078_v52  ;;  %v1030_v8 = vmul.f32 %v3106_v42, %v3106_v42 }
 0x191   :  { %v3181_v43 = vadd.f32 %v863_v2, %v2970_v54  ;;  %v865_v19 = vpop.f32.mrb[17].mxu0  ;;  %v3184_v15 = vadd.f32 %v925_v53, %v3014_v18  ;;  %v927_v31 = vpop.f32.mrb[62].mxu1 }
 0x192   :  { %3804 = vst [vmem:[#allocation5_spill] sm:$0xff] %v3176_v39  ;;  %v3187_v0 = vadd.f32 %v865_v19, %v2972_v55  ;;  %v867_v48 = vpop.f32.mrb[18].mxu0  ;;  %v3190_v14 = vadd.f32 %v927_v31, %v3016_v23  ;;  %v929_v51 = vpop.f32.mrb[63].mxu1  ;;  %v953_v55 = vsel %vm932_vm0, %v3124_v17, 0.0  ;;  %v950_v23 = vadd.f32 %v3100_v62, %v949_v21 }
 0x193   :  { %3805 = vst [vmem:[#allocation6_spill] sm:$0xff] %v3181_v43  ;;  %3806 = vst [vmem:[#allocation7_spill] sm:$0xff] %v3184_v15  ;;  %v3195_v54 = vadd.f32 %v867_v48, %v2974_v56  ;;  %v869_v41 = vpop.f32.mrb[19].mxu0  ;;  %v3198_v18 = vadd.f32 %v929_v51, %v3018_v26  ;;  %1123 = vadd.xlane.f32.xlu0 %v1122_v50  ;;  %v954_v49 = vadd.f32 %v3114_v46, %v953_v55 }
 0x194   :  { %3807 = vst [vmem:[#allocation8_spill] sm:$0xff] %v3187_v0  ;;  %3808 = vst [vmem:[#allocation9_spill] sm:$0xff] %v3190_v14  ;;  %v3203_v52 = vadd.f32 %v869_v41, %v2976_v57  ;;  %1127 = vadd.xlane.f32.xlu1 %v1126_v5  ;;  %v997_v56 = vsel %vm932_vm0, %v3103_v13, 0.0  ;;  %v1001_v26 = vsel %vm932_vm0, %v3117_v28, 0.0  ;;  %v1081_v50 = vsel %vm932_vm0, %v1030_v8, 0.0 }
 0x195   :  { %3809 = vst [vmem:[#allocation10_spill] sm:$0xff] %v3198_v18  ;;  %v998_v53 = vadd.f32 %v997_v56, %v3097_v27  ;;  %v1002_v31 = vadd.f32 %v1001_v26, %v3109_v12  ;;  %v1054_v48 = vmul.f32 %v3103_v13, %v3103_v13  ;;  %v1085_v21 = vsel %vm932_vm0, %v1032_v32, 0.0 }
 0x196   :  { %v1031_v55 = vmul.f32 %v3114_v46, %v3114_v46  ;;  %v1053_v56 = vmul.f32 %v3097_v27, %v3097_v27  ;;  %v1055_v26 = vmul.f32 %v3109_v12, %v3109_v12 }
 0x197   :  { %951 = vadd.xlane.f32.xlu0 %v950_v23 }
 0x198   :  { %v873_v57 = vpop.f32.mrb[20].mxu0  ;;  %955 = vadd.xlane.f32.xlu1 %v954_v49  ;;  %v1129_v49 = vsel %vm932_vm0, %v1054_v48, 0.0  ;;  %v1009_v48 = vsel %vm932_vm0, %v3161_v22, 0.0 }
 0x199   :  { %v3216_v45 = vadd.f32 %v873_v57, %v2978_v58  ;;  %v875_v2 = vpop.f32.mrb[21].mxu0  ;;  %v1029_v58 = vmul.f32 %v3100_v62, %v3100_v62  ;;  %v957_v57 = vsel %vm932_vm0, %v3149_v37, 0.0 }
 0x19a   :  { %v3220_v25 = vadd.f32 %v875_v2, %v2980_v59  ;;  %v877_v19 = vpop.f32.mrb[22].mxu0  ;;  %v1056_v59 = vmul.f32 %v3117_v28, %v3117_v28  ;;  %v961_v2 = vsel %vm932_vm0, %v3167_v33, 0.0 }
 0x19b   :  { %3810 = vst [vmem:[#allocation11_spill] sm:$0xff] %v3216_v45  ;;  %v3227_v51 = vadd.f32 %v877_v19, %v2982_v60  ;;  %v879_v5 = vpop.f32.mrb[23].mxu0  ;;  %999 = vadd.xlane.f32.xlu0 %v998_v53  ;;  %v1082_v23 = vadd.f32 %v1081_v50, %v1029_v58  ;;  %v1086_v60 = vadd.f32 %v1085_v21, %v1031_v55  ;;  %v1940_v21 = vmov 0  }
 0x19c   :  { %3811 = vst [vmem:[#allocation12_spill] sm:$0xff] %v3220_v25  ;;  %v3235_v41 = vadd.f32 %v879_v5, %v2984_v61  ;;  %1003 = vadd.xlane.f32.xlu1 %v1002_v31  ;;  %v1133_v8 = vsel %vm932_vm0, %v1056_v59, 0.0  ;;  %v1130_v61 = vadd.f32 %v1129_v49, %v1053_v56  ;;  %v958_v53 = vadd.f32 %v3140_v1, %v957_v57 }
 0x19d   :  { %3812 = vst [vmem:[#allocation13_spill] sm:$0xff] %v3227_v51  ;;  %v1134_v32 = vadd.f32 %v1133_v8, %v1055_v26  ;;  %v962_v19 = vadd.f32 %v3158_v44, %v961_v2  ;;  %v1005_v31 = vsel %vm932_vm0, %v3143_v7, 0.0  ;;  %v1034_v50 = vmul.f32 %v3149_v37, %v3149_v37  ;;  %1894 = vset.pattern.permute.xlu0 %v1940_v21  ;;  %v1326_v37 = vld [vmem:[%s3785_s2 + $0x98] sm:$0xff] }
 0x19e   :  { %3813 = vst [vmem:[#allocation14_spill] sm:$0xff] %v3235_v41  ;;  %v1036_v5 = vmul.f32 %v3167_v33, %v3167_v33  ;;  %v1006_v58 = vadd.f32 %v1005_v31, %v3136_v24  ;;  %1895 = vset.pattern.permute.xlu1 %v1940_v21  ;;  %v1010_v59 = vadd.f32 %v1009_v48, %v3152_v47  ;;  %v969_v48 = vsel %vm932_vm0, %v3203_v52, 0.0 }
 0x19f   :  { %1083 = vadd.xlane.f32.xlu0 %v1082_v23  ;;  %v1089_v55 = vsel %vm932_vm0, %v1034_v50, 0.0  ;;  %v1058_v23 = vmul.f32 %v3143_v7, %v3143_v7  ;;  %v1060_v56 = vmul.f32 %v3161_v22, %v3161_v22  ;;  %v1035_v8 = vmul.f32 %v3158_v44, %v3158_v44  ;;  %v1319_v7 = vld [vmem:[%s3785_s2 + $0x60] sm:$0xff] }
 0x1a0   :  { %1087 = vadd.xlane.f32.xlu1 %v1086_v60  ;;  %v1033_v60 = vmul.f32 %v3140_v1, %v3140_v1  ;;  %v1093_v49 = vsel %vm932_vm0, %v1036_v5, 0.0  ;;  %v1057_v57 = vmul.f32 %v3136_v24, %v3136_v24  ;;  %v965_v50 = vsel %vm932_vm0, %v3187_v0, 0.0 }
 0x1a1   :  { %v1141_v2 = vsel %vm932_vm0, %v1060_v56, 0.0  ;;  %v966_v5 = vadd.f32 %v3181_v43, %v965_v50  ;;  %v1013_v21 = vsel %vm932_vm0, %v3184_v15, 0.0 }
 0x1a2   :  { %v1090_v26 = vadd.f32 %v1089_v55, %v1033_v60  ;;  %v1017_v55 = vsel %vm932_vm0, %v3198_v18, 0.0  ;;  %v1014_v60 = vadd.f32 %v1013_v21, %v3176_v39  ;;  %v973_v21 = vsel %vm932_vm0, %v3220_v25, 0.0 }
 0x1a3   :  { %1131 = vadd.xlane.f32.xlu0 %v1130_v61  ;;  %v1094_v61 = vadd.f32 %v1093_v49, %v1035_v8  ;;  %v1018_v49 = vadd.f32 %v1017_v55, %v3190_v14  ;;  %v1062_v8 = vmul.f32 %v3184_v15, %v3184_v15  ;;  %v977_v55 = vsel %vm932_vm0, %v3235_v41, 0.0 }
 0x1a4   :  { %1135 = vadd.xlane.f32.xlu1 %v1134_v32  ;;  %v1137_v32 = vsel %vm932_vm0, %v1058_v23, 0.0  ;;  %v1040_v23 = vmul.f32 %v3203_v52, %v3203_v52 }
 0x1a7   :  { %959 = vadd.xlane.f32.xlu0 %v958_v53  ;;  %v1059_v53 = vmul.f32 %v3152_v47, %v3152_v47 }
 0x1a8   :  { %963 = vadd.xlane.f32.xlu1 %v962_v19  ;;  %v1138_v19 = vadd.f32 %v1137_v32, %v1057_v57  ;;  %v1064_v32 = vmul.f32 %v3198_v18, %v3198_v18  ;;  %v1039_v57 = vmul.f32 %v3195_v54, %v3195_v54 }
 0x1a9   :  { %v1142_v31 = vadd.f32 %v1141_v2, %v1059_v53 }
 0x1aa   :  { %v1149_v50 = vsel %vm932_vm0, %v1064_v32, 0.0 }
 0x1ab   :  { %1007 = vadd.xlane.f32.xlu0 %v1006_v58  ;;  %v970_v58 = vadd.f32 %v3195_v54, %v969_v48  ;;  %v1063_v48 = vmul.f32 %v3190_v14, %v3190_v14 }
 0x1ac   :  { %1011 = vadd.xlane.f32.xlu1 %v1010_v59  ;;  %v1038_v59 = vmul.f32 %v3187_v0, %v3187_v0 }
 0x1ae   :  { %v1097_v56 = vsel %vm932_vm0, %v1038_v59, 0.0  ;;  %v1042_v59 = vmul.f32 %v3220_v25, %v3220_v25 }
 0x1af   :  { %1091 = vadd.xlane.f32.xlu0 %v1090_v26  ;;  %v1037_v26 = vmul.f32 %v3181_v43, %v3181_v43 }
 0x1b0   :  { %1095 = vadd.xlane.f32.xlu1 %v1094_v61  ;;  %v1101_v61 = vsel %vm932_vm0, %v1040_v23, 0.0  ;;  %v1044_v23 = vmul.f32 %v3235_v41, %v3235_v41 }
 0x1b1   :  { %v1098_v2 = vadd.f32 %v1097_v56, %v1037_v26  ;;  %v1102_v53 = vadd.f32 %v1101_v61, %v1039_v57  ;;  %v1105_v56 = vsel %vm932_vm0, %v1042_v59, 0.0  ;;  %v1043_v61 = vmul.f32 %v3227_v51, %v3227_v51 }
 0x1b2   :  { %v1109_v26 = vsel %vm932_vm0, %v1044_v23, 0.0 }
 0x1b3   :  { %1139 = vadd.xlane.f32.xlu0 %v1138_v19  ;;  %v1145_v19 = vsel %vm932_vm0, %v1062_v8, 0.0  ;;  %v1041_v8 = vmul.f32 %v3216_v45, %v3216_v45  ;;  %v1110_v57 = vadd.f32 %v1109_v26, %v1043_v61 }
 0x1b4   :  { %1143 = vadd.xlane.f32.xlu1 %v1142_v31  ;;  %v1061_v31 = vmul.f32 %v3176_v39, %v3176_v39 }
 0x1b5   :  { %v1106_v32 = vadd.f32 %v1105_v56, %v1041_v8 }
 0x1b7   :  { %967 = vadd.xlane.f32.xlu0 %v966_v5  ;;  %v1146_v5 = vadd.f32 %v1145_v19, %v1061_v31 }
 0x1b8   :  { %971 = vadd.xlane.f32.xlu1 %v970_v58  ;;  %v1150_v58 = vadd.f32 %v1149_v50, %v1063_v48 }
 0x1bb   :  { %1015 = vadd.xlane.f32.xlu0 %v1014_v60  ;;  %v974_v60 = vadd.f32 %v3216_v45, %v973_v21 }
 0x1bc   :  { %1019 = vadd.xlane.f32.xlu1 %v1018_v49  ;;  %v978_v49 = vadd.f32 %v3227_v51, %v977_v55  ;;  %v1320_v51 = vld [vmem:[%s3785_s2 + $0x68] sm:$0xff] }
 0x1bf   :  { %1099 = vadd.xlane.f32.xlu0 %v1098_v2 }
 0x1c0   :  { %1103 = vadd.xlane.f32.xlu1 %v1102_v53 }
 0x1c3   :  { %1147 = vadd.xlane.f32.xlu0 %v1146_v5 }
 0x1c4   :  { %1151 = vadd.xlane.f32.xlu1 %v1150_v58 }
 0x1c7   :  { %975 = vadd.xlane.f32.xlu0 %v974_v60 }
 0x1c8   :  { %979 = vadd.xlane.f32.xlu1 %v978_v49 }
 0x1cb   :  { %1107 = vadd.xlane.f32.xlu0 %v1106_v32 }
 0x1cc   :  { %1111 = vadd.xlane.f32.xlu1 %v1110_v57 }
 0x204   :  { %v936_v2 = vpop.xlane.xlu0 %935 }
 0x205   :  { %v988_v53 = vpop.xlane.xlu1 %987  ;;  %v3327_v5 = vmul.f32 0.0051020407, %v936_v2 }
 0x206   :  { %v3325_v50 = vmul.f32 0.0051020407, %v988_v53 }
 0x207   :  { %v1197_v8 = vmul.f32 %v3327_v5, %v3327_v5 }
 0x208   :  { %v984_v19 = vpop.xlane.xlu0 %983  ;;  %v1210_v59 = vmul.f32 %v3325_v50, %v3325_v50 }
 0x209   :  { %v1072_v31 = vpop.xlane.xlu1 %1071  ;;  %v3337_v26 = vmul.f32 0.0051020407, %v984_v19 }
 0x20a   :  { %v1176_v23 = vmul.f32 0.0051020407, %v1072_v31 }
 0x20b   :  { %v1209_v31 = vmul.f32 %v3337_v26, %v3337_v26 }
 0x20c   :  { %v940_v48 = vpop.xlane.xlu0 %939 }
 0x20d   :  { %v3329_v58 = vmul.f32 0.0051020407, %v940_v48  ;;  %v1120_v21 = vpop.xlane.xlu1 %1119 }
 0x20e   :  { %v1188_v55 = vmul.f32 0.0051020407, %v1120_v21 }
 0x20f   :  { %v1198_v60 = vmul.f32 %v3329_v58, %v3329_v58 }
 0x210   :  { %v1232_v49 = vsub.f32 %v1188_v55, %v1210_v59  ;;  %v1068_v56 = vpop.xlane.xlu0 %1067 }
 0x211   :  { %v1220_v61 = vsub.f32 %v1176_v23, %v1198_v60  ;;  %v1175_v32 = vmul.f32 0.0051020407, %v1068_v56  ;;  %v944_v57 = vpop.xlane.xlu1 %943 }
 0x212   :  { %v1254_v53 = vmax.f32 %v1232_v49, 0.0  ;;  %v3341_v23 = vmul.f32 0.0051020407, %v944_v57 }
 0x213   :  { %v1242_v2 = vmax.f32 %v1220_v61, 0.0  ;;  %v1219_v48 = vsub.f32 %v1175_v32, %v1197_v8 }
 0x214   :  { %v1116_v15 = vpop.xlane.xlu0 %1115  ;;  %v1276_v55 = vadd.f32 1e-05, %v1254_v53  ;;  %v1199_v32 = vmul.f32 %v3341_v23, %v3341_v23 }
 0x215   :  { %v1264_v21 = vadd.f32 1e-05, %v1242_v2  ;;  %v1241_v39 = vmax.f32 %v1219_v48, 0.0  ;;  %v1187_v25 = vmul.f32 0.0051020407, %v1116_v15  ;;  %v948_v59 = vpop.xlane.xlu1 %947 }
 0x216   :  { %v3343_v49 = vmul.f32 0.0051020407, %v948_v59 }
 0x217   :  { %1896 = vrsqrt.f32 %v1264_v21  ;;  %v1263_v45 = vadd.f32 1e-05, %v1241_v39  ;;  %v1231_v0 = vsub.f32 %v1187_v25, %v1209_v31  ;;  %v1308_v21 = vld [vmem:[%s3785_s2 + $0x8] sm:$0xff] }
 0x218   :  { %v992_v19 = vpop.xlane.xlu0 %991 }
 0x219   :  { %1898 = vrsqrt.f32 %v1263_v45  ;;  %v1253_v60 = vmax.f32 %v1231_v0, 0.0  ;;  %v996_v56 = vpop.xlane.xlu1 %995  ;;  %v3347_v15 = vmul.f32 0.0051020407, %v992_v19  ;;  %v1200_v45 = vmul.f32 %v3343_v49, %v3343_v49 }
 0x21a   :  { %1900 = vrsqrt.f32 %v1276_v55  ;;  %v3351_v25 = vmul.f32 0.0051020407, %v996_v56 }
 0x21b   :  { %v1275_v8 = vadd.f32 1e-05, %v1253_v60  ;;  %v1211_v59 = vmul.f32 %v3347_v15, %v3347_v15  ;;  %v1307_v60 = vld [vmem:[%s3785_s2] sm:$0xff] }
 0x21c   :  { %v1076_v61 = vpop.xlane.xlu0 %1075  ;;  %v1212_v56 = vmul.f32 %v3351_v25, %v3351_v25 }
 0x21d   :  { %1902 = vrsqrt.f32 %v1275_v8  ;;  %v1177_v2 = vmul.f32 0.0051020407, %v1076_v61  ;;  %v1080_v39 = vpop.xlane.xlu1 %1079 }
 0x21e   :  { %v1178_v0 = vmul.f32 0.0051020407, %v1080_v39 }
 0x21f   :  { %v1221_v57 = vsub.f32 %v1177_v2, %v1199_v32 }
 0x220   :  { %v1222_v53 = vsub.f32 %v1178_v0, %v1200_v45  ;;  %v1124_v48 = vpop.xlane.xlu0 %1123 }
 0x221   :  { %v1897_v31 = vpop.eup %1896  ;;  %v1189_v55 = vmul.f32 0.0051020407, %v1124_v48  ;;  %v1128_v19 = vpop.xlane.xlu1 %1127  ;;  %v1243_v2 = vmax.f32 %v1221_v57, 0.0 }
 0x222   :  { %v1244_v8 = vmax.f32 %v1222_v53, 0.0  ;;  %v1190_v61 = vmul.f32 0.0051020407, %v1128_v19  ;;  %v1330_v45 = vmul.f32 %v1897_v31, %v1308_v21 }
 0x223   :  { %v1899_v32 = vpop.eup %1898  ;;  %v1233_v39 = vsub.f32 %v1189_v55, %v1211_v59  ;;  %v1265_v59 = vadd.f32 1e-05, %v1243_v2 }
 0x224   :  { %v1266_v0 = vadd.f32 1e-05, %v1244_v8  ;;  %v1234_v43 = vsub.f32 %v1190_v61, %v1212_v56  ;;  %v952_v18 = vpop.xlane.xlu0 %951  ;;  %v1329_v14 = vmul.f32 %v1899_v32, %v1307_v60  ;;  %v1901_v41 = vpop.eup %1900  ;;  %v1374_v21 = vmul.f32 %v1330_v45, %v3329_v58  ;;  %v1352_v61 = vld [vmem:[%s3786_s3 + $0x8] sm:$0xff] }
 0x225   :  { %v956_v48 = vpop.xlane.xlu1 %955  ;;  %v1255_v31 = vmax.f32 %v1233_v39, 0.0  ;;  %v1342_v60 = vmul.f32 %v1901_v41, %v1320_v51  ;;  %v3377_v51 = vmul.f32 0.0051020407, %v952_v18  ;;  %v1364_v41 = vld [vmem:[%s3786_s3 + $0x68] sm:$0xff] }
 0x226   :  { %1904 = vrsqrt.f32 %v1266_v0  ;;  %v1256_v53 = vmax.f32 %v1234_v43, 0.0  ;;  %1419 = vperm.xlu0 %1894, %v1329_v14   ;;  %v3373_v32 = vmul.f32 0.0051020407, %v956_v48  ;;  %v1396_v39 = vsub.f32 %v1352_v61, %v1374_v21  ;;  %v1351_v48 = vld [vmem:[%s3786_s3] sm:$0xff] }
 0x227   :  { %v1903_v57 = vpop.eup %1902  ;;  %v1277_v43 = vadd.f32 1e-05, %v1255_v31  ;;  %v1386_v58 = vmul.f32 %v1342_v60, %v3325_v50  ;;  %v1373_v0 = vmul.f32 %v1329_v14, %v3327_v5  ;;  %v1310_v14 = vld [vmem:[%s3785_s2 + $0x18] sm:$0xff] }
 0x228   :  { %v1278_v55 = vadd.f32 1e-05, %v1256_v53  ;;  %v1000_v19 = vpop.xlane.xlu0 %999  ;;  %v1341_v56 = vmul.f32 %v1903_v57, %v1319_v7  ;;  %v1202_v53 = vmul.f32 %v3373_v32, %v3373_v32 }
 0x229   :  { %v1004_v8 = vpop.xlane.xlu1 %1003  ;;  %v1408_v21 = vsub.f32 %v1364_v41, %v1386_v58  ;;  %v3395_v61 = vmul.f32 0.0051020407, %v1000_v19 }
 0x22a   :  { %1906 = vrsqrt.f32 %v1278_v55  ;;  %1484 = vperm.xlu0 %1894, %v1342_v60   ;;  %1479 = vperm.xlu1 %1895, %v1341_v56   ;;  %v3387_v57 = vmul.f32 0.0051020407, %v1004_v8  ;;  %v1395_v55 = vsub.f32 %v1351_v48, %v1373_v0  ;;  %v1385_v60 = vmul.f32 %v1341_v56, %v3337_v26  ;;  %v1322_v26 = vld [vmem:[%s3785_s2 + $0x78] sm:$0xff] }
 0x22b   :  { %1908 = vrsqrt.f32 %v1265_v59  ;;  %v1201_v8 = vmul.f32 %v3377_v51, %v3377_v51 }
 0x22c   :  { %v1084_v2 = vpop.xlane.xlu0 %1083  ;;  %1910 = vrsqrt.f32 %v1277_v43  ;;  %v1214_v43 = vmul.f32 %v3387_v57, %v3387_v57 }
 0x22d   :  { %v1088_v7 = vpop.xlane.xlu1 %1087  ;;  %v1179_v18 = vmul.f32 0.0051020407, %v1084_v2 }
 0x22e   :  { %v1180_v59 = vmul.f32 0.0051020407, %v1088_v7  ;;  %1578 = vperm.xlu0 %1894, %v1396_v39   ;;  %1424 = vperm.xlu1 %1895, %v1330_v45   ;;  %v1363_v45 = vld [vmem:[%s3786_s3 + $0x60] sm:$0xff] }
 0x22f   :  { %v1223_v19 = vsub.f32 %v1179_v18, %v1201_v8 }
 0x230   :  { %v1905_v50 = vpop.eup %1904  ;;  %v1224_v5 = vsub.f32 %v1180_v59, %v1202_v53  ;;  %v1132_v31 = vpop.xlane.xlu0 %1131  ;;  %v1407_v59 = vsub.f32 %v1363_v45, %v1385_v60 }
 0x231   :  { %v1136_v39 = vpop.xlane.xlu1 %1135  ;;  %v3400_v7 = vmul.f32 %v1905_v50, %v1310_v14  ;;  %v1191_v56 = vmul.f32 0.0051020407, %v1132_v31  ;;  %v1213_v50 = vmul.f32 %v3395_v61, %v3395_v61  ;;  %v1354_v31 = vld [vmem:[%s3786_s3 + $0x18] sm:$0xff]  ;;  %v1245_v60 = vmax.f32 %v1223_v19, 0.0 }
 0x232   :  { %v1246_v2 = vmax.f32 %v1224_v5, 0.0  ;;  %v1192_v58 = vmul.f32 0.0051020407, %v1136_v39  ;;  %1638 = vperm.xlu0 %1894, %v1408_v21   ;;  %1573 = vperm.xlu1 %1895, %v1395_v55   ;;  %v1309_v21 = vld [vmem:[%s3785_s2 + $0x10] sm:$0xff]  ;;  %v1366_v19 = vld [vmem:[%s3786_s3 + $0x78] sm:$0xff] }
 0x233   :  { %v1376_v55 = vmul.f32 %v3400_v7, %v3343_v49  ;;  %v1235_v8 = vsub.f32 %v1191_v56, %v1213_v50  ;;  %v1321_v49 = vld [vmem:[%s3785_s2 + $0x70] sm:$0xff]  ;;  %v1267_v56 = vadd.f32 1e-05, %v1245_v60 }
 0x234   :  { %v1907_v0 = vpop.eup %1906  ;;  %v1268_v41 = vadd.f32 1e-05, %v1246_v2  ;;  %v1236_v48 = vsub.f32 %v1192_v58, %v1214_v43  ;;  %v960_v53 = vpop.xlane.xlu0 %959 }
 0x235   :  { %v1909_v14 = vpop.eup %1908  ;;  %v964_v24 = vpop.xlane.xlu1 %963  ;;  %v1344_v5 = vmul.f32 %v1907_v0, %v1322_v26  ;;  %v1398_v26 = vsub.f32 %v1354_v31, %v1376_v55 }
 0x236   :  { %1912 = vrsqrt.f32 %v1268_v41  ;;  %v1258_v18 = vmax.f32 %v1236_v48, 0.0  ;;  %1633 = vperm.xlu1 %1895, %v1407_v59   ;;  %v1331_v43 = vmul.f32 %v1909_v14, %v1309_v21  ;;  %v1911_v2 = vpop.eup %1910  ;;  %v3421_v41 = vmul.f32 0.0051020407, %v964_v24  ;;  %v1312_v24 = vld [vmem:[%s3785_s2 + $0x28] sm:$0xff] }
 0x237   :  { %1494 = vperm.xlu0 %1894, %v1344_v5   ;;  %v1388_v0 = vmul.f32 %v1344_v5, %v3351_v25  ;;  %v1257_v48 = vmax.f32 %v1235_v8, 0.0  ;;  %v1343_v14 = vmul.f32 %v1911_v2, %v1321_v49  ;;  %v3434_v2 = vmul.f32 0.0051020407, %v960_v53 }
 0x238   :  { %v1280_v39 = vadd.f32 1e-05, %v1258_v18  ;;  %v1008_v45 = vpop.xlane.xlu0 %1007  ;;  %v1204_v55 = vmul.f32 %v3421_v41, %v3421_v41 }
 0x239   :  { %v1012_v58 = vpop.xlane.xlu1 %1011  ;;  %v1410_v21 = vsub.f32 %v1366_v19, %v1388_v0  ;;  %v1279_v5 = vadd.f32 1e-05, %v1257_v48 }
 0x23a   :  { %1914 = vrsqrt.f32 %v1280_v39  ;;  %1429 = vperm.xlu1 %1895, %v1331_v43   ;;  %v3428_v18 = vmul.f32 0.0051020407, %v1012_v58  ;;  %v1375_v39 = vmul.f32 %v1331_v43, %v3341_v23  ;;  %v1353_v58 = vld [vmem:[%s3786_s3 + $0x10] sm:$0xff]  ;;  %v1324_v23 = vld [vmem:[%s3785_s2 + $0x88] sm:$0xff] }
 0x23b   :  { %1588 = vperm.xlu0 %1894, %v1398_v26   ;;  %1916 = vrsqrt.f32 %v1267_v56 }
 0x23c   :  { %v1092_v59 = vpop.xlane.xlu0 %1091  ;;  %v1216_v0 = vmul.f32 %v3428_v18, %v3428_v18  ;;  %1918 = vrsqrt.f32 %v1279_v5  ;;  %v1365_v5 = vld [vmem:[%s3786_s3 + $0x70] sm:$0xff] }
 0x23d   :  { %v1096_v50 = vpop.xlane.xlu1 %1095  ;;  %v1181_v53 = vmul.f32 0.0051020407, %v1092_v59 }
 0x23e   :  { %v1182_v25 = vmul.f32 0.0051020407, %v1096_v50  ;;  %1489 = vperm.xlu1 %1895, %v1343_v14  }
 0x23f   :  { %1648 = vperm.xlu0 %1894, %v1410_v21  }
 0x240   :  { %v1913_v31 = vpop.eup %1912  ;;  %v1226_v60 = vsub.f32 %v1182_v25, %v1204_v55  ;;  %v1140_v8 = vpop.xlane.xlu0 %1139  ;;  %v1397_v55 = vsub.f32 %v1353_v58, %v1375_v39  ;;  %v1387_v25 = vmul.f32 %v1343_v14, %v3347_v15  ;;  %v1356_v15 = vld [vmem:[%s3786_s3 + $0x28] sm:$0xff] }
 0x241   :  { %v1144_v26 = vpop.xlane.xlu1 %1143  ;;  %v3439_v49 = vmul.f32 %v1913_v31, %v1312_v24  ;;  %v1203_v24 = vmul.f32 %v3434_v2, %v3434_v2  ;;  %v3452_v31 = vmul.f32 0.0051020407, %v1008_v45  ;;  %v1193_v39 = vmul.f32 0.0051020407, %v1140_v8  ;;  %v1368_v8 = vld [vmem:[%s3786_s3 + $0x88] sm:$0xff] }
 0x242   :  { %v1248_v19 = vmax.f32 %v1226_v60, 0.0  ;;  %v1194_v56 = vmul.f32 0.0051020407, %v1144_v26  ;;  %1434 = vperm.xlu1 %1895, %v3400_v7  }
 0x243   :  { %v1378_v59 = vmul.f32 %v3439_v49, %v3373_v32  ;;  %v1225_v14 = vsub.f32 %v1181_v53, %v1203_v24 }
 0x244   :  { %v1915_v43 = vpop.eup %1914  ;;  %v1270_v48 = vadd.f32 1e-05, %v1248_v19  ;;  %v1238_v50 = vsub.f32 %v1194_v56, %v1216_v0  ;;  %v3447_v21 = vpop.xlane.xlu0 %967  ;;  %v1409_v0 = vsub.f32 %v1365_v5, %v1387_v25  ;;  %v1215_v56 = vmul.f32 %v3452_v31, %v3452_v31 }
 0x245   :  { %v972_v7 = vpop.xlane.xlu1 %971  ;;  %v1346_v60 = vmul.f32 %v1915_v43, %v1324_v23  ;;  %v1917_v19 = vpop.eup %1916  ;;  %v1400_v32 = vsub.f32 %v1356_v15, %v1378_v59  ;;  %v1311_v43 = vld [vmem:[%s3785_s2 + $0x20] sm:$0xff] }
 0x246   :  { %1920 = vrsqrt.f32 %v1270_v48  ;;  %v1260_v26 = vmax.f32 %v1238_v50, 0.0  ;;  %1583 = vperm.xlu1 %1895, %v1397_v55   ;;  %v3470_v53 = vmul.f32 0.0051020407, %v972_v7  ;;  %v1247_v50 = vmax.f32 %v1225_v14, 0.0  ;;  %v1919_v5 = vpop.eup %1918  ;;  %v1314_v14 = vld [vmem:[%s3785_s2 + $0x38] sm:$0xff] }
 0x247   :  { %1504 = vperm.xlu0 %1894, %v1346_v60   ;;  %v1390_v48 = vmul.f32 %v1346_v60, %v3387_v57  ;;  %v1237_v55 = vsub.f32 %v1193_v39, %v1215_v56  ;;  %v1333_v24 = vmul.f32 %v1917_v19, %v1311_v43  ;;  %v1323_v57 = vld [vmem:[%s3785_s2 + $0x80] sm:$0xff] }
 0x248   :  { %v1282_v45 = vadd.f32 1e-05, %v1260_v26  ;;  %v3462_v58 = vpop.xlane.xlu0 %1015  ;;  %v1206_v7 = vmul.f32 %v3470_v53, %v3470_v53  ;;  %v1269_v39 = vadd.f32 1e-05, %v1247_v50 }
 0x249   :  { %v1020_v23 = vpop.xlane.xlu1 %1019  ;;  %v1412_v26 = vsub.f32 %v1368_v8, %v1390_v48 }
 0x24a   :  { %1922 = vrsqrt.f32 %v1282_v45  ;;  %1643 = vperm.xlu1 %1895, %v1409_v0   ;;  %v3480_v60 = vmul.f32 0.0051020407, %v1020_v23  ;;  %v1259_v45 = vmax.f32 %v1237_v55, 0.0 }
 0x24b   :  { %1598 = vperm.xlu0 %1894, %v1400_v32   ;;  %v1345_v32 = vmul.f32 %v1919_v5, %v1323_v57  ;;  %1924 = vrsqrt.f32 %v1269_v39  ;;  %v1377_v5 = vmul.f32 %v1333_v24, %v3377_v51  ;;  %v3494_v57 = vmul.f32 0.0051020407, %v3447_v21  ;;  %v1358_v51 = vld [vmem:[%s3786_s3 + $0x38] sm:$0xff] }
 0x24c   :  { %v1100_v25 = vpop.xlane.xlu0 %1099  ;;  %v1218_v23 = vmul.f32 %v3480_v60, %v3480_v60  ;;  %v1281_v50 = vadd.f32 1e-05, %v1259_v45 }
 0x24d   :  { %v1104_v59 = vpop.xlane.xlu1 %1103 }
 0x24e   :  { %1439 = vperm.xlu1 %1895, %v1333_v24   ;;  %v1184_v15 = vmul.f32 0.0051020407, %v1104_v59 }
 0x24f   :  { %1658 = vperm.xlu0 %1894, %v1412_v26  }
 0x250   :  { %v1921_v0 = vpop.eup %1920  ;;  %v1228_v19 = vsub.f32 %v1184_v15, %v1206_v7  ;;  %v1148_v56 = vpop.xlane.xlu0 %1147 }
 0x251   :  { %v1152_v43 = vpop.xlane.xlu1 %1151  ;;  %v3485_v48 = vmul.f32 %v1921_v0, %v1314_v14  ;;  %v1355_v0 = vld [vmem:[%s3786_s3 + $0x20] sm:$0xff] }
 0x252   :  { %v1250_v8 = vmax.f32 %v1228_v19, 0.0  ;;  %1499 = vperm.xlu1 %1895, %v1345_v32   ;;  %v1196_v59 = vmul.f32 0.0051020407, %v1152_v43  ;;  %v1399_v24 = vsub.f32 %v1355_v0, %v1377_v5 }
 0x253   :  { %v1380_v19 = vmul.f32 %v3485_v48, %v3421_v41  ;;  %v1205_v41 = vmul.f32 %v3494_v57, %v3494_v57 }
 0x254   :  { %v1923_v55 = vpop.eup %1922  ;;  %v1272_v26 = vadd.f32 1e-05, %v1250_v8  ;;  %v1240_v7 = vsub.f32 %v1196_v59, %v1218_v23  ;;  %v976_v45 = vpop.xlane.xlu0 %975  ;;  %v1389_v23 = vmul.f32 %v1345_v32, %v3395_v61  ;;  %v3511_v8 = vmul.f32 0.0051020407, %v3462_v58  ;;  %v1370_v32 = vld [vmem:[%s3786_s3 + $0x98] sm:$0xff] }
 0x255   :  { %v980_v15 = vpop.xlane.xlu1 %979  ;;  %v1348_v14 = vmul.f32 %v1923_v55, %v1326_v37  ;;  %v1183_v37 = vmul.f32 0.0051020407, %v1100_v25  ;;  %v1402_v59 = vsub.f32 %v1358_v51, %v1380_v19  ;;  %v1367_v55 = vld [vmem:[%s3786_s3 + $0x80] sm:$0xff]  ;;  %v1925_v0 = vpop.eup %1924 }
 0x256   :  { %1926 = vrsqrt.f32 %v1272_v26  ;;  %v1262_v39 = vmax.f32 %v1240_v7, 0.0  ;;  %1444 = vperm.xlu1 %1895, %v3439_v49   ;;  %v3502_v43 = vmul.f32 0.0051020407, %v980_v15  ;;  %v1195_v26 = vmul.f32 0.0051020407, %v1148_v56  ;;  %v1316_v56 = vld [vmem:[%s3785_s2 + $0x48] sm:$0xff] }
 0x257   :  { %1928 = vrsqrt.f32 %v1281_v50  ;;  %1514 = vperm.xlu0 %1894, %v1348_v14   ;;  %v1392_v50 = vmul.f32 %v1348_v14, %v3428_v18  ;;  %v1227_v58 = vsub.f32 %v1183_v37, %v1205_v41  ;;  %v1411_v15 = vsub.f32 %v1367_v55, %v1389_v23 }
 0x258   :  { %v1284_v21 = vadd.f32 1e-05, %v1262_v39  ;;  %v1208_v25 = vmul.f32 %v3502_v43, %v3502_v43  ;;  %v1108_v7 = vpop.xlane.xlu0 %1107  ;;  %v1217_v18 = vmul.f32 %v3511_v8, %v3511_v8  ;;  %v3524_v14 = vmul.f32 0.0051020407, %v976_v45  ;;  %v1313_v39 = vld [vmem:[%s3785_s2 + $0x30] sm:$0xff] }
 0x259   :  { %v1112_v49 = vpop.xlane.xlu1 %1111  ;;  %v1414_v19 = vsub.f32 %v1370_v32, %v1392_v50  ;;  %v1249_v37 = vmax.f32 %v1227_v58, 0.0  ;;  %v1325_v50 = vld [vmem:[%s3785_s2 + $0x90] sm:$0xff] }
 0x25a   :  { %1930 = vrsqrt.f32 %v1284_v21  ;;  %1593 = vperm.xlu1 %1895, %v1399_v24   ;;  %v1186_v61 = vmul.f32 0.0051020407, %v1112_v49  ;;  %v1239_v21 = vsub.f32 %v1195_v26, %v1217_v18  ;;  %v1185_v24 = vmul.f32 0.0051020407, %v1108_v7 }
 0x25b   :  { %1608 = vperm.xlu0 %1894, %v1402_v59   ;;  %v1335_v49 = vmul.f32 %v1925_v0, %v1313_v39  ;;  %v1207_v59 = vmul.f32 %v3524_v14, %v3524_v14  ;;  %v1360_v0 = vld [vmem:[%s3786_s3 + $0x48] sm:$0xff] }
 0x25c   :  { %v1230_v5 = vsub.f32 %v1186_v61, %v1208_v25  ;;  %v1328_v25 = vld [vmem:[%s3785_s2 + $0xa8] sm:$0xff]  ;;  %v1271_v61 = vadd.f32 1e-05, %v1249_v37  ;;  %v1261_v32 = vmax.f32 %v1239_v21, 0.0 }
 0x25d   :  { %v1229_v58 = vsub.f32 %v1185_v24, %v1207_v59  ;;  %v1379_v39 = vmul.f32 %v1335_v49, %v3434_v2  ;;  %v1369_v2 = vld [vmem:[%s3786_s3 + $0x90] sm:$0xff] }
 0x25e   :  { %v1252_v51 = vmax.f32 %v1230_v5, 0.0  ;;  %1653 = vperm.xlu1 %1895, %v1411_v15   ;;  %v1283_v18 = vadd.f32 1e-05, %v1261_v32 }
 0x25f   :  { %1668 = vperm.xlu0 %1894, %v1414_v19   ;;  %v1251_v19 = vmax.f32 %v1229_v58, 0.0 }
 0x260   :  { %v1927_v23 = vpop.eup %1926  ;;  %v1274_v41 = vadd.f32 1e-05, %v1252_v51 }
 0x261   :  { %v1929_v45 = vpop.eup %1928  ;;  %v1338_v55 = vmul.f32 %v1927_v23, %v1316_v56  ;;  %v1357_v56 = vld [vmem:[%s3786_s3 + $0x30] sm:$0xff]  ;;  %v1273_v37 = vadd.f32 1e-05, %v1251_v19 }
 0x262   :  { %1932 = vrsqrt.f32 %v1274_v41  ;;  %1449 = vperm.xlu1 %1895, %v1335_v49   ;;  %v1347_v7 = vmul.f32 %v1929_v45, %v1325_v50  ;;  %v1401_v24 = vsub.f32 %v1357_v56, %v1379_v39  ;;  %v1361_v39 = vld [vmem:[%s3786_s3 + $0x50] sm:$0xff]  ;;  %v1371_v56 = vld [vmem:[%s3786_s3 + $0xa0] sm:$0xff] }
 0x263   :  { %1464 = vperm.xlu0 %1894, %v1338_v55   ;;  %v1382_v15 = vmul.f32 %v1338_v55, %v3470_v53  ;;  %1934 = vrsqrt.f32 %v1271_v61  ;;  %v1318_v53 = vld [vmem:[%s3785_s2 + $0x58] sm:$0xff] }
 0x264   :  { %v1931_v26 = vpop.eup %1930  ;;  %1936 = vrsqrt.f32 %v1283_v18  ;;  %v1391_v23 = vmul.f32 %v1347_v7, %v3452_v31  ;;  %v1315_v31 = vld [vmem:[%s3785_s2 + $0x40] sm:$0xff] }
 0x265   :  { %v1350_v5 = vmul.f32 %v1931_v26, %v1328_v25  ;;  %v1404_v51 = vsub.f32 %v1360_v0, %v1382_v15  ;;  %1938 = vrsqrt.f32 %v1273_v37  ;;  %v1372_v25 = vld [vmem:[%s3786_s3 + $0xa8] sm:$0xff] }
 0x266   :  { %1509 = vperm.xlu1 %1895, %v1347_v7   ;;  %v1413_v45 = vsub.f32 %v1369_v2, %v1391_v23 }
 0x267   :  { %1524 = vperm.xlu0 %1894, %v1350_v5   ;;  %v1394_v50 = vmul.f32 %v1350_v5, %v3480_v60  ;;  %v1359_v60 = vld [vmem:[%s3786_s3 + $0x40] sm:$0xff]  ;;  %v1317_v5 = vld [vmem:[%s3785_s2 + $0x50] sm:$0xff] }
 0x269   :  { %v1416_v58 = vsub.f32 %v1372_v25, %v1394_v50 }
 0x26a   :  { %1454 = vperm.xlu1 %1895, %v3485_v48   ;;  %v1362_v48 = vld [vmem:[%s3786_s3 + $0x58] sm:$0xff] }
 0x26b   :  { %1618 = vperm.xlu0 %1894, %v1404_v51  }
 0x26c   :  { %v1933_v21 = vpop.eup %1932 }
 0x26d   :  { %v1340_v41 = vmul.f32 %v1933_v21, %v1318_v53  ;;  %v1935_v59 = vpop.eup %1934 }
 0x26e   :  { %1603 = vperm.xlu1 %1895, %v1401_v24   ;;  %v1337_v61 = vmul.f32 %v1935_v59, %v1315_v31  ;;  %v1937_v32 = vpop.eup %1936 }
 0x26f   :  { %1474 = vperm.xlu0 %1894, %v1340_v41   ;;  %v1384_v49 = vmul.f32 %v1340_v41, %v3502_v43  ;;  %v1327_v43 = vld [vmem:[%s3785_s2 + $0xa0] sm:$0xff]  ;;  %v1939_v15 = vpop.eup %1938 }
 0x270   :  { %v1349_v26 = vmul.f32 %v1937_v32, %v1327_v43  ;;  %v1381_v7 = vmul.f32 %v1337_v61, %v3494_v57  ;;  %v1339_v18 = vmul.f32 %v1939_v15, %v1317_v5 }
 0x271   :  { %v1406_v55 = vsub.f32 %v1362_v48, %v1384_v49 }
 0x272   :  { %1663 = vperm.xlu1 %1895, %v1413_v45   ;;  %v1403_v0 = vsub.f32 %v1359_v60, %v1381_v7  ;;  %v1383_v19 = vmul.f32 %v1339_v18, %v3524_v14  ;;  %v1393_v51 = vmul.f32 %v1349_v26, %v3511_v8 }
 0x273   :  { %1628 = vperm.xlu0 %1894, %v1406_v55  }
 0x274   :  { %v1405_v57 = vsub.f32 %v1361_v39, %v1383_v19  ;;  %v1415_v53 = vsub.f32 %v1371_v56, %v1393_v51 }
 0x276   :  { %1459 = vperm.xlu1 %1895, %v1337_v61  }
 0x277   :  { %1678 = vperm.xlu0 %1894, %v1416_v58  }
 0x27a   :  { %1519 = vperm.xlu1 %1895, %v1349_v26  }
 0x27e   :  { %1613 = vperm.xlu1 %1895, %v1403_v0  }
 0x282   :  { %1469 = vperm.xlu1 %1895, %v1339_v18  }
 0x286   :  { %1623 = vperm.xlu1 %1895, %v1405_v57  }
 0x28a   :  { %1673 = vperm.xlu1 %1895, %v1415_v53  }
 0x2a5   :  { %v1420_v37 = vpop.permute.xlu0 %1419 }
 0x2a6   :  { %v1527_v48 = vmul.f32 %v3023_v34, %v1420_v37  ;;  %v1528_v8 = vmul.f32 %v3028_v63, %v1420_v37 }
 0x2a9   :  { %v1485_v21 = vpop.permute.xlu0 %1484  ;;  %v1480_v24 = vpop.permute.xlu1 %1479 }
 0x2aa   :  { %v1553_v49 = vmul.f32 %v1485_v21, %v3030_v3  ;;  %v1554_v45 = vmul.f32 %v1485_v21, %v3036_v11  ;;  %v1551_v3 = vmul.f32 %v1480_v24, %v3020_v30  ;;  %v1552_v11 = vmul.f32 %v1480_v24, %v3025_v36 }
 0x2ad   :  { %v1579_v23 = vpop.permute.xlu0 %1578  ;;  %v1425_v14 = vpop.permute.xlu1 %1424 }
 0x2ae   :  { %v1529_v41 = vmul.f32 %v3033_v10, %v1425_v14  ;;  %v1530_v2 = vmul.f32 %v3039_v38, %v1425_v14 }
 0x2b0   :  { %v1683_v59 = vadd.f32 %v1579_v23, %v1529_v41  ;;  %v1684_v55 = vadd.f32 %v1579_v23, %v1530_v2 }
 0x2b1   :  { %v1639_v31 = vpop.permute.xlu0 %1638  ;;  %v1574_v50 = vpop.permute.xlu1 %1573 }
 0x2b2   :  { %1727 = vst [vmem:[%s3787_s4 + $0x10] sm:$0xff] %v1683_v59  ;;  %1728 = vst.msk [vmem:[%s3787_s4 + $0x18] sm:$0xff] %vm932_vm0, %v1684_v55  ;;  %v1707_v34 = vadd.f32 %v1639_v31, %v1553_v49  ;;  %v1708_v10 = vadd.f32 %v1639_v31, %v1554_v45  ;;  %v1681_v63 = vadd.f32 %v1574_v50, %v1527_v48 }
 0x2b3   :  { %v1682_v38 = vadd.f32 %v1574_v50, %v1528_v8 }
 0x2b4   :  { %1751 = vst [vmem:[%s3787_s4 + $0xd0] sm:$0xff] %v1707_v34  ;;  %1752 = vst.msk [vmem:[%s3787_s4 + $0xd8] sm:$0xff] %vm932_vm0, %v1708_v10 }
 0x2b5   :  { %1725 = vst [vmem:[%s3787_s4] sm:$0xff] %v1681_v63  ;;  %1726 = vst.msk [vmem:[%s3787_s4 + $0x8] sm:$0xff] %vm932_vm0, %v1682_v38  ;;  %v1634_v30 = vpop.permute.xlu1 %1633 }
 0x2b6   :  { %v1705_v36 = vadd.f32 %v1634_v30, %v1551_v3  ;;  %v1706_v25 = vadd.f32 %v1634_v30, %v1552_v11  ;;  %v1495_v61 = vpop.permute.xlu0 %1494 }
 0x2b7   :  { %v1557_v43 = vmul.f32 %v1495_v61, %v3072_v4  ;;  %v1558_v26 = vmul.f32 %v1495_v61, %v3080_v40 }
 0x2b8   :  { %1749 = vst [vmem:[%s3787_s4 + $0xc0] sm:$0xff] %v1705_v36  ;;  %1750 = vst.msk [vmem:[%s3787_s4 + $0xc8] sm:$0xff] %vm932_vm0, %v1706_v25 }
 0x2b9   :  { %v1430_v32 = vpop.permute.xlu1 %1429 }
 0x2ba   :  { %v1589_v58 = vpop.permute.xlu0 %1588  ;;  %v1531_v40 = vmul.f32 %v3060_v29, %v1430_v32  ;;  %v1532_v19 = vmul.f32 %v3069_v6, %v1430_v32 }
 0x2bd   :  { %v1490_v7 = vpop.permute.xlu1 %1489 }
 0x2be   :  { %v1649_v15 = vpop.permute.xlu0 %1648  ;;  %v1556_v29 = vmul.f32 %v1490_v7, %v3063_v35 }
 0x2bf   :  { %v1711_v60 = vadd.f32 %v1649_v15, %v1557_v43  ;;  %v1712_v5 = vadd.f32 %v1649_v15, %v1558_v26 }
 0x2c1   :  { %1755 = vst [vmem:[%s3787_s4 + $0xf0] sm:$0xff] %v1711_v60  ;;  %1756 = vst.msk [vmem:[%s3787_s4 + $0xf8] sm:$0xff] %vm932_vm0, %v1712_v5  ;;  %v1435_v0 = vpop.permute.xlu1 %1434 }
 0x2c2   :  { %v1533_v18 = vmul.f32 %v3077_v16, %v1435_v0  ;;  %v1534_v4 = vmul.f32 %v3084_v9, %v1435_v0  ;;  %v1555_v9 = vmul.f32 %v1490_v7, %v3054_v20  ;;  %v3814_v0 = vld [vmem:[#allocation4_spill] sm:$0xff] }
 0x2c4   :  { %v1687_v39 = vadd.f32 %v1589_v58, %v1533_v18  ;;  %v1688_v57 = vadd.f32 %v1589_v58, %v1534_v4 }
 0x2c5   :  { %v1584_v51 = vpop.permute.xlu1 %1583 }
 0x2c6   :  { %1731 = vst [vmem:[%s3787_s4 + $0x30] sm:$0xff] %v1687_v39  ;;  %1732 = vst.msk [vmem:[%s3787_s4 + $0x38] sm:$0xff] %vm932_vm0, %v1688_v57  ;;  %v1685_v56 = vadd.f32 %v1584_v51, %v1531_v40  ;;  %v1686_v16 = vadd.f32 %v1584_v51, %v1532_v19  ;;  %v1505_v53 = vpop.permute.xlu0 %1504  ;;  %v3816_v39 = vld [vmem:[#allocation3_spill] sm:$0xff]  ;;  %v3817_v51 = vld [vmem:[#allocation13_spill] sm:$0xff] }
 0x2c7   :  { %v1561_v20 = vmul.f32 %v1505_v53, %v3109_v12  ;;  %v1562_v35 = vmul.f32 %v1505_v53, %v3117_v28 }
 0x2c8   :  { %1729 = vst [vmem:[%s3787_s4 + $0x20] sm:$0xff] %v1685_v56  ;;  %1730 = vst.msk [vmem:[%s3787_s4 + $0x28] sm:$0xff] %vm932_vm0, %v1686_v16  ;;  %v3818_v16 = vld [vmem:[#allocation14_spill] sm:$0xff] }
 0x2c9   :  { %v1644_v6 = vpop.permute.xlu1 %1643 }
 0x2ca   :  { %v1709_v37 = vadd.f32 %v1644_v6, %v1555_v9  ;;  %v1710_v21 = vadd.f32 %v1644_v6, %v1556_v29  ;;  %v1599_v24 = vpop.permute.xlu0 %1598 }
 0x2cc   :  { %1753 = vst [vmem:[%s3787_s4 + $0xe0] sm:$0xff] %v1709_v37  ;;  %1754 = vst.msk [vmem:[%s3787_s4 + $0xe8] sm:$0xff] %vm932_vm0, %v1710_v21 }
 0x2cd   :  { %v1440_v23 = vpop.permute.xlu1 %1439 }
 0x2ce   :  { %v1659_v14 = vpop.permute.xlu0 %1658  ;;  %v1535_v45 = vmul.f32 %v3100_v62, %v1440_v23  ;;  %v1536_v59 = vmul.f32 %v3106_v42, %v1440_v23  ;;  %v3820_v23 = vld [vmem:[#allocation10_spill] sm:$0xff] }
 0x2cf   :  { %v1715_v41 = vadd.f32 %v1659_v14, %v1561_v20  ;;  %v1716_v2 = vadd.f32 %v1659_v14, %v1562_v35  ;;  %v3819_v20 = vld [vmem:[#allocation9_spill] sm:$0xff] }
 0x2d1   :  { %1759 = vst [vmem:[%s3787_s4 + $0x110] sm:$0xff] %v1715_v41  ;;  %1760 = vst.msk [vmem:[%s3787_s4 + $0x118] sm:$0xff] %vm932_vm0, %v1716_v2  ;;  %v1500_v48 = vpop.permute.xlu1 %1499 }
 0x2d2   :  { %v1559_v10 = vmul.f32 %v1500_v48, %v3097_v27  ;;  %v1560_v62 = vmul.f32 %v1500_v48, %v3103_v13 }
 0x2d5   :  { %v1445_v8 = vpop.permute.xlu1 %1444 }
 0x2d6   :  { %v1537_v49 = vmul.f32 %v3114_v46, %v1445_v8  ;;  %v1538_v12 = vmul.f32 %v3124_v17, %v1445_v8  ;;  %v1515_v28 = vpop.permute.xlu0 %1514 }
 0x2d7   :  { %v1565_v42 = vmul.f32 %v1515_v28, %v3152_v47  ;;  %v1566_v63 = vmul.f32 %v1515_v28, %v3161_v22 }
 0x2d8   :  { %v1691_v55 = vadd.f32 %v1599_v24, %v1537_v49  ;;  %v1692_v31 = vadd.f32 %v1599_v24, %v1538_v12  ;;  %v3821_v12 = vld [vmem:[#allocation6_spill] sm:$0xff] }
 0x2d9   :  { %v1594_v50 = vpop.permute.xlu1 %1593 }
 0x2da   :  { %1735 = vst [vmem:[%s3787_s4 + $0x50] sm:$0xff] %v1691_v55  ;;  %1736 = vst.msk [vmem:[%s3787_s4 + $0x58] sm:$0xff] %vm932_vm0, %v1692_v31  ;;  %v1689_v46 = vadd.f32 %v1594_v50, %v1535_v45  ;;  %v1690_v34 = vadd.f32 %v1594_v50, %v1536_v59  ;;  %v1609_v17 = vpop.permute.xlu0 %1608  ;;  %v3822_v45 = vld [vmem:[#allocation8_spill] sm:$0xff] }
 0x2dc   :  { %1733 = vst [vmem:[%s3787_s4 + $0x40] sm:$0xff] %v1689_v46  ;;  %1734 = vst.msk [vmem:[%s3787_s4 + $0x48] sm:$0xff] %vm932_vm0, %v1690_v34  ;;  %v3823_v34 = vld [vmem:[#allocation11_spill] sm:$0xff] }
 0x2dd   :  { %v1654_v38 = vpop.permute.xlu1 %1653 }
 0x2de   :  { %v1713_v3 = vadd.f32 %v1654_v38, %v1559_v10  ;;  %v1714_v11 = vadd.f32 %v1654_v38, %v1560_v62  ;;  %v1669_v30 = vpop.permute.xlu0 %1668  ;;  %v3824_v10 = vld [vmem:[#allocation12_spill] sm:$0xff] }
 0x2df   :  { %v1719_v27 = vadd.f32 %v1669_v30, %v1565_v42  ;;  %v1720_v36 = vadd.f32 %v1669_v30, %v1566_v63  ;;  %v3826_v30 = vld [vmem:[#allocation7_spill] sm:$0xff] }
 0x2e0   :  { %1757 = vst [vmem:[%s3787_s4 + $0x100] sm:$0xff] %v1713_v3  ;;  %1758 = vst.msk [vmem:[%s3787_s4 + $0x108] sm:$0xff] %vm932_vm0, %v1714_v11  ;;  %v3825_v3 = vld [vmem:[#allocation5_spill] sm:$0xff] }
 0x2e1   :  { %1763 = vst [vmem:[%s3787_s4 + $0x130] sm:$0xff] %v1719_v27  ;;  %1764 = vst.msk [vmem:[%s3787_s4 + $0x138] sm:$0xff] %vm932_vm0, %v1720_v36  ;;  %v1450_v13 = vpop.permute.xlu1 %1449 }
 0x2e2   :  { %v1465_v47 = vpop.permute.xlu0 %1464  ;;  %v1539_v5 = vmul.f32 %v3140_v1, %v1450_v13  ;;  %v1540_v18 = vmul.f32 %v3814_v0, %v1450_v13 }
 0x2e3   :  { %v1545_v61 = vmul.f32 %v3195_v54, %v1465_v47  ;;  %v1546_v32 = vmul.f32 %v3203_v52, %v1465_v47  ;;  %v3815_v52 = vld [vmem:[#allocation2_spill] sm:$0xff] }
 0x2e5   :  { %v1510_v22 = vpop.permute.xlu1 %1509 }
 0x2e6   :  { %v1525_v25 = vpop.permute.xlu0 %1524  ;;  %v1563_v19 = vmul.f32 %v1510_v22, %v3815_v52  ;;  %v1564_v57 = vmul.f32 %v1510_v22, %v3816_v39 }
 0x2e7   :  { %v1569_v35 = vmul.f32 %v1525_v25, %v3819_v20  ;;  %v1570_v14 = vmul.f32 %v1525_v25, %v3820_v23 }
 0x2e9   :  { %v1455_v58 = vpop.permute.xlu1 %1454 }
 0x2ea   :  { %v1541_v43 = vmul.f32 %v3158_v44, %v1455_v58  ;;  %v1542_v26 = vmul.f32 %v3167_v33, %v1455_v58  ;;  %v1619_v7 = vpop.permute.xlu0 %1618 }
 0x2eb   :  { %v1699_v15 = vadd.f32 %v1619_v7, %v1545_v61  ;;  %v1700_v60 = vadd.f32 %v1619_v7, %v1546_v32 }
 0x2ec   :  { %v1695_v4 = vadd.f32 %v1609_v17, %v1541_v43  ;;  %v1696_v40 = vadd.f32 %v1609_v17, %v1542_v26 }
 0x2ed   :  { %1743 = vst [vmem:[%s3787_s4 + $0x90] sm:$0xff] %v1699_v15  ;;  %1744 = vst.msk [vmem:[%s3787_s4 + $0x98] sm:$0xff] %vm932_vm0, %v1700_v60  ;;  %v1604_v44 = vpop.permute.xlu1 %1603 }
 0x2ee   :  { %1739 = vst [vmem:[%s3787_s4 + $0x70] sm:$0xff] %v1695_v4  ;;  %1740 = vst.msk [vmem:[%s3787_s4 + $0x78] sm:$0xff] %vm932_vm0, %v1696_v40  ;;  %v1693_v1 = vadd.f32 %v1604_v44, %v1539_v5  ;;  %v1694_v33 = vadd.f32 %v1604_v44, %v1540_v18  ;;  %v1475_v54 = vpop.permute.xlu0 %1474 }
 0x2ef   :  { %v1549_v56 = vmul.f32 %v3817_v51, %v1475_v54  ;;  %v1550_v53 = vmul.f32 %v3818_v16, %v1475_v54 }
 0x2f0   :  { %1737 = vst [vmem:[%s3787_s4 + $0x60] sm:$0xff] %v1693_v1  ;;  %1738 = vst.msk [vmem:[%s3787_s4 + $0x68] sm:$0xff] %vm932_vm0, %v1694_v33 }
 0x2f1   :  { %v1664_v9 = vpop.permute.xlu1 %1663 }
 0x2f2   :  { %v1717_v29 = vadd.f32 %v1664_v9, %v1563_v19  ;;  %v1718_v6 = vadd.f32 %v1664_v9, %v1564_v57  ;;  %v1629_v37 = vpop.permute.xlu0 %1628 }
 0x2f3   :  { %v1703_v21 = vadd.f32 %v1629_v37, %v1549_v56  ;;  %v1704_v24 = vadd.f32 %v1629_v37, %v1550_v53 }
 0x2f4   :  { %1761 = vst [vmem:[%s3787_s4 + $0x120] sm:$0xff] %v1717_v29  ;;  %1762 = vst.msk [vmem:[%s3787_s4 + $0x128] sm:$0xff] %vm932_vm0, %v1718_v6 }
 0x2f5   :  { %1747 = vst [vmem:[%s3787_s4 + $0xb0] sm:$0xff] %v1703_v21  ;;  %1748 = vst.msk [vmem:[%s3787_s4 + $0xb8] sm:$0xff] %vm932_vm0, %v1704_v24  ;;  %v1460_v41 = vpop.permute.xlu1 %1459 }
 0x2f6   :  { %v1679_v2 = vpop.permute.xlu0 %1678  ;;  %v1543_v28 = vmul.f32 %v3821_v12, %v1460_v41  ;;  %v1544_v59 = vmul.f32 %v3822_v45, %v1460_v41 }
 0x2f7   :  { %v1723_v48 = vadd.f32 %v1679_v2, %v1569_v35  ;;  %v1724_v8 = vadd.f32 %v1679_v2, %v1570_v14 }
 0x2f9   :  { %1767 = vst [vmem:[%s3787_s4 + $0x150] sm:$0xff] %v1723_v48  ;;  %1768 = vst.msk [vmem:[%s3787_s4 + $0x158] sm:$0xff] %vm932_vm0, %v1724_v8  ;;  %v1520_v49 = vpop.permute.xlu1 %1519 }
 0x2fa   :  { %v1567_v11 = vmul.f32 %v1520_v49, %v3825_v3  ;;  %v1568_v27 = vmul.f32 %v1520_v49, %v3826_v30 }
 0x2fd   :  { %v1614_v55 = vpop.permute.xlu1 %1613 }
 0x2fe   :  { %v1697_v31 = vadd.f32 %v1614_v55, %v1543_v28  ;;  %v1698_v50 = vadd.f32 %v1614_v55, %v1544_v59 }
 0x300   :  { %1741 = vst [vmem:[%s3787_s4 + $0x80] sm:$0xff] %v1697_v31  ;;  %1742 = vst.msk [vmem:[%s3787_s4 + $0x88] sm:$0xff] %vm932_vm0, %v1698_v50 }
 0x301   :  { %v1470_v46 = vpop.permute.xlu1 %1469 }
 0x302   :  { %v1547_v17 = vmul.f32 %v3823_v34, %v1470_v46  ;;  %v1548_v62 = vmul.f32 %v3824_v10, %v1470_v46 }
 0x305   :  { %v1624_v42 = vpop.permute.xlu1 %1623 }
 0x306   :  { %v1701_v63 = vadd.f32 %v1624_v42, %v1547_v17  ;;  %v1702_v38 = vadd.f32 %v1624_v42, %v1548_v62 }
 0x308   :  { %1745 = vst [vmem:[%s3787_s4 + $0xa0] sm:$0xff] %v1701_v63  ;;  %1746 = vst.msk [vmem:[%s3787_s4 + $0xa8] sm:$0xff] %vm932_vm0, %v1702_v38 }
 0x309   :  { %v1674_v36 = vpop.permute.xlu1 %1673 }
 0x30a   :  { %v1721_v13 = vadd.f32 %v1674_v36, %v1567_v11  ;;  %v1722_v47 = vadd.f32 %v1674_v36, %v1568_v27 }
 0x30c   :  { %1765 = vst [vmem:[%s3787_s4 + $0x140] sm:$0xff] %v1721_v13  ;;  %1766 = vst.msk [vmem:[%s3787_s4 + $0x148] sm:$0xff] %vm932_vm0, %v1722_v47 }

</bundles_post_ra>
